<compile_context>
chip_gen: v7x
topology: tpu7x:2x2x1
jax: 0.10.0
libtpu: 0.0.40
codegen_flags: <defaults>
</compile_context>

<pallas_src>
import functools

import jax
import jax.numpy as jnp
from jax.experimental import pallas as pl
from jax.experimental.pallas import tpu as pltpu

BN_EPS = 1e-5      # nn.BatchNorm1d default eps
COS_EPS = 1e-8     # F.cosine_similarity default eps


# ---------------------------------------------------------------------------
# Fused kernel: K-tiled backbone matmul for both views, then (last grid step)
# projector + predictor + cosine loss, all VMEM-resident.
# ---------------------------------------------------------------------------
def _simsiam_kernel(x1_ref, x2_ref,
                    bb_w_ref, bb_b_ref,
                    pj1_w_ref, pj1_p_ref,
                    pj2_w_ref, pj2_p_ref,
                    pj3_w_ref, pj3_p_ref,
                    pd1_w_ref, pd1_p_ref,
                    pd2_w_ref, pd2_b_ref,
                    loss_ref,
                    h1_acc, h2_acc):
    k = pl.program_id(0)
    nk = pl.num_programs(0)

    @pl.when(k == 0)
    def _():
        h1_acc[...] = jnp.zeros_like(h1_acc)
        h2_acc[...] = jnp.zeros_like(h2_acc)

    # Backbone stand-in (flatten + Linear), K-tiled: bf16 MXU operands,
    # f32 accumulation in VMEM scratch.
    w_blk = bb_w_ref[...]                               # (tk, feat) bf16
    h1_acc[...] += jnp.dot(x1_ref[...].astype(jnp.bfloat16), w_blk,
                           preferred_element_type=jnp.float32)
    h2_acc[...] += jnp.dot(x2_ref[...].astype(jnp.bfloat16), w_blk,
                           preferred_element_type=jnp.float32)

    @pl.when(k == nk - 1)
    def _():
        B = h1_acc.shape[0]

        def linear(h, w_ref, bias):
            # bf16 operands, f32 accumulation; bias broadcast over rows.
            return jnp.dot(h.astype(jnp.bfloat16), w_ref[...],
                           preferred_element_type=jnp.float32) + bias

        def bn(y, gamma, beta):
            # nn.BatchNorm1d training mode: biased per-batch statistics.
            mean = jnp.mean(y, axis=0, keepdims=True)
            d = y - mean
            var = jnp.mean(d * d, axis=0, keepdims=True)
            return d * jax.lax.rsqrt(var + BN_EPS) * gamma + beta

        def layer_bn_relu(h, w_ref, p_ref, relu):
            # p_ref rows: 0 = linear bias, 1 = BN gamma, 2 = BN beta.
            bias, gamma, beta = p_ref[0:1, :], p_ref[1:2, :], p_ref[2:3, :]
            y = bn(linear(h, w_ref, bias), gamma, beta)
            return jnp.maximum(y, 0.0) if relu else y

        def encode_predict(h):
            # projection_MLP (num_layers == 3)
            h = layer_bn_relu(h, pj1_w_ref, pj1_p_ref, relu=True)
            h = layer_bn_relu(h, pj2_w_ref, pj2_p_ref, relu=True)
            z = layer_bn_relu(h, pj3_w_ref, pj3_p_ref, relu=False)
            # prediction_MLP
            g = layer_bn_relu(z, pd1_w_ref, pd1_p_ref, relu=True)
            p = linear(g, pd2_w_ref, pd2_b_ref[...])
            return z, p

        z1, p1 = encode_predict(h1_acc[...] + bb_b_ref[...])
        z2, p2 = encode_predict(h2_acc[...] + bb_b_ref[...])

        def neg_cos_sum(p, z):
            # -sum_i cos(p_i, z_i); denom = max(||p||*||z||, eps) as in
            # F.cosine_similarity.  (detach affects gradients only.)
            dot = jnp.sum(p * z, axis=-1, keepdims=True)              # (B,1)
            denom = jnp.maximum(
                jnp.sqrt(jnp.sum(p * p, axis=-1, keepdims=True) *
                         jnp.sum(z * z, axis=-1, keepdims=True)), COS_EPS)
            return -jnp.sum(dot / denom, axis=0, keepdims=True)       # (1,1)

        # L = D(p1, z2)/2 + D(p2, z1)/2
        loss = (neg_cos_sum(p1, z2) + neg_cos_sum(p2, z1)) * (0.5 / B)
        # Lane-dense store; wrapper reads [0, 0].
        loss_ref[...] = loss * jnp.ones(loss_ref.shape, jnp.float32)


# ---------------------------------------------------------------------------
# Parameter construction (deterministic, in-script).
# Weights stored pre-transposed vs torch: (in, out), bf16.
# BN layers pack [bias; gamma; beta] into one (3, out) f32 slab.
# ---------------------------------------------------------------------------
def init_params(key, in_dim, feat_dim=128, hidden_dim=256, proj_out=128,
                pred_hidden=256, pred_out=128):
    def lin(k, i, o):
        kw, kb = jax.random.split(k)
        w = (jax.random.normal(kw, (i, o), jnp.float32) * 0.02).astype(jnp.bfloat16)
        b = jax.random.normal(kb, (o,), jnp.float32) * 0.02
        return w, b

    def packed_bn_layer(k, i, o):
        w, b = lin(k, i, o)
        slab = jnp.stack(
            [b, jnp.ones((o,), jnp.float32), jnp.zeros((o,), jnp.float32)],
            axis=0)                                   # (3, o): bias, gamma, beta
        return w, slab

    keys = jax.random.split(key, 6)
    p = {}
    w, b = lin(keys[0], in_dim, feat_dim)             # backbone stand-in
    p["bb_w"], p["bb_b"] = w, b.reshape(1, -1)
    p["pj1_w"], p["pj1_p"] = packed_bn_layer(keys[1], feat_dim, hidden_dim)
    p["pj2_w"], p["pj2_p"] = packed_bn_layer(keys[2], hidden_dim, hidden_dim)
    p["pj3_w"], p["pj3_p"] = packed_bn_layer(keys[3], hidden_dim, proj_out)
    p["pd1_w"], p["pd1_p"] = packed_bn_layer(keys[4], proj_out, pred_hidden)
    w, b = lin(keys[5], pred_hidden, pred_out)
    p["pd2_w"], p["pd2_b"] = w, b.reshape(1, -1)
    return p


# ---------------------------------------------------------------------------
# Forward pass: one pallas_call, 1-D "arbitrary" grid over the backbone K dim.
# ---------------------------------------------------------------------------
def _simsiam_forward_impl(x1, x2, params):
    B = x1.shape[0]
    in_dim = x1[0].size
    x1f = x1.reshape(B, in_dim)                       # reshape only, no concat
    x2f = x2.reshape(B, in_dim)
    feat_dim = params["bb_w"].shape[1]

    # K tile for the backbone matmul (lane/sublane aligned, divides in_dim).
    block_k = 512 if (in_dim % 512 == 0) else in_dim
    nk = in_dim // block_k

    def full(shape):
        # Whole-array block, constant index -> fetched once, VMEM-resident.
        return pl.BlockSpec(shape, lambda k: (0,) * len(shape))

    grid_spec = pltpu.PrefetchScalarGridSpec(
        num_scalar_prefetch=0,
        grid=(nk,),
        in_specs=[
            pl.BlockSpec((B, block_k), lambda k: (0, k)),          # x1
            pl.BlockSpec((B, block_k), lambda k: (0, k)),          # x2
            pl.BlockSpec((block_k, feat_dim), lambda k: (k, 0)),   # bb_w (K-tiled)
            full(params["bb_b"].shape),
            full(params["pj1_w"].shape), full(params["pj1_p"].shape),
            full(params["pj2_w"].shape), full(params["pj2_p"].shape),
            full(params["pj3_w"].shape), full(params["pj3_p"].shape),
            full(params["pd1_w"].shape), full(params["pd1_p"].shape),
            full(params["pd2_w"].shape), full(params["pd2_b"].shape),
        ],
        out_specs=pl.BlockSpec((1, 128), lambda k: (0, 0)),
        scratch_shapes=[pltpu.VMEM((B, feat_dim), jnp.float32),
                        pltpu.VMEM((B, feat_dim), jnp.float32)],
    )

    loss = pl.pallas_call(
        _simsiam_kernel,
        out_shape=jax.ShapeDtypeStruct((1, 128), jnp.float32),
        grid_spec=grid_spec,
        compiler_params=pltpu.CompilerParams(
            dimension_semantics=("arbitrary",),
            vmem_limit_bytes=32 * 1024 * 1024),
    )(x1f, x2f,
      params["bb_w"], params["bb_b"],
      params["pj1_w"], params["pj1_p"],
      params["pj2_w"], params["pj2_p"],
      params["pj3_w"], params["pj3_p"],
      params["pd1_w"], params["pd1_p"],
      params["pd2_w"], params["pd2_b"])
    return {"loss": loss[0, 0]}


simsiam_forward = jax.jit(_simsiam_forward_impl)


# ---------------------------------------------------------------------------
if __name__ == "__main__":
    key = jax.random.PRNGKey(0)
    k_x1, k_x2, k_p = jax.random.split(key, 3)

    # Per-view batch of 8 (f32 sublane-aligned), small spatial input.
    B, C, H, W = 8, 4, 16, 16
    x1 = jax.random.normal(k_x1, (B, C, H, W), jnp.float32)
    x2 = jax.random.normal(k_x2, (B, C, H, W), jnp.float32)

    params = init_params(k_p, in_dim=C * H * W, feat_dim=128,
                         hidden_dim=256, proj_out=128,
                         pred_hidden=256, pred_out=128)

    out = simsiam_forward(x1, x2, params)
    loss = jax.block_until_ready(out["loss"])
    assert loss.shape == () and bool(jnp.isfinite(loss))
    print("KERNEL_OK")
</pallas_src>

<mosaic_0001>
module attributes {stable_mosaic.version = 11 : i64} {
  func.func @_simsiam_kernel(%arg0: i32, %arg1: memref<8x512xf32, #tpu.memory_space<vmem>>, %arg2: memref<8x512xf32, #tpu.memory_space<vmem>>, %arg3: memref<512x128xbf16, #tpu.memory_space<vmem>>, %arg4: memref<1x128xf32, #tpu.memory_space<vmem>>, %arg5: memref<128x256xbf16, #tpu.memory_space<vmem>>, %arg6: memref<3x256xf32, #tpu.memory_space<vmem>>, %arg7: memref<256x256xbf16, #tpu.memory_space<vmem>>, %arg8: memref<3x256xf32, #tpu.memory_space<vmem>>, %arg9: memref<256x128xbf16, #tpu.memory_space<vmem>>, %arg10: memref<3x128xf32, #tpu.memory_space<vmem>>, %arg11: memref<128x256xbf16, #tpu.memory_space<vmem>>, %arg12: memref<3x256xf32, #tpu.memory_space<vmem>>, %arg13: memref<256x128xbf16, #tpu.memory_space<vmem>>, %arg14: memref<1x128xf32, #tpu.memory_space<vmem>>, %arg15: memref<1x128xf32, #tpu.memory_space<vmem>>, %arg16: memref<8x128xf32, #tpu.memory_space<vmem>>, %arg17: memref<8x128xf32, #tpu.memory_space<vmem>>) attributes {dimension_semantics = [#tpu.dimension_semantics<arbitrary>], iteration_bounds = array<i64: 2>, scalar_prefetch = 0 : i64, scratch_operands = 2 : i64, tpu.core_type = #tpu.core_type<tc>, window_params = [{transform_indices = @transform_0, window_bounds = array<i64: 8, 512>}, {transform_indices = @transform_1, window_bounds = array<i64: 8, 512>}, {transform_indices = @transform_2, window_bounds = array<i64: 512, 128>}, {pipeline_mode = #tpu.pipeline_mode<synchronous>, transform_indices = @transform_3, window_bounds = array<i64: 1, 128>}, {pipeline_mode = #tpu.pipeline_mode<synchronous>, transform_indices = @transform_4, window_bounds = array<i64: 128, 256>}, {pipeline_mode = #tpu.pipeline_mode<synchronous>, transform_indices = @transform_5, window_bounds = array<i64: 3, 256>}, {pipeline_mode = #tpu.pipeline_mode<synchronous>, transform_indices = @transform_6, window_bounds = array<i64: 256, 256>}, {pipeline_mode = #tpu.pipeline_mode<synchronous>, transform_indices = @transform_7, window_bounds = array<i64: 3, 256>}, {pipeline_mode = #tpu.pipeline_mode<synchronous>, transform_indices = @transform_8, window_bounds = array<i64: 256, 128>}, {pipeline_mode = #tpu.pipeline_mode<synchronous>, transform_indices = @transform_9, window_bounds = array<i64: 3, 128>}, {pipeline_mode = #tpu.pipeline_mode<synchronous>, transform_indices = @transform_10, window_bounds = array<i64: 128, 256>}, {pipeline_mode = #tpu.pipeline_mode<synchronous>, transform_indices = @transform_11, window_bounds = array<i64: 3, 256>}, {pipeline_mode = #tpu.pipeline_mode<synchronous>, transform_indices = @transform_12, window_bounds = array<i64: 256, 128>}, {pipeline_mode = #tpu.pipeline_mode<synchronous>, transform_indices = @transform_13, window_bounds = array<i64: 1, 128>}, {pipeline_mode = #tpu.pipeline_mode<synchronous>, transform_indices = @transform_14, window_bounds = array<i64: 1, 128>}]} {
    %c0_i32 = arith.constant 0 : i32
    %0 = arith.cmpi eq, %arg0, %c0_i32 : i32
    %1 = arith.extui %0 : i1 to i32
    %c0_i32_0 = arith.constant 0 : i32
    %2 = arith.cmpi ne, %1, %c0_i32_0 : i32
    scf.if %2 {
      %cst_16 = arith.constant 0.000000e+00 : f32
      %19 = vector.broadcast %cst_16 : f32 to vector<8x128xf32>
      %c0_17 = arith.constant 0 : index
      %c0_18 = arith.constant 0 : index
      %20 = vector.load %arg16[%c0_17, %c0_18] : memref<8x128xf32, #tpu.memory_space<vmem>>, vector<8x128xf32>
      tpu.vector_store %arg16[%c0_17, %c0_18], %19 {strides = array<i32>} : memref<8x128xf32, #tpu.memory_space<vmem>>, vector<8x128xf32>,
      %cst_19 = arith.constant 0.000000e+00 : f32
      %21 = vector.broadcast %cst_19 : f32 to vector<8x128xf32>
      %c0_20 = arith.constant 0 : index
      %c0_21 = arith.constant 0 : index
      %22 = vector.load %arg17[%c0_20, %c0_21] : memref<8x128xf32, #tpu.memory_space<vmem>>, vector<8x128xf32>
      tpu.vector_store %arg17[%c0_20, %c0_21], %21 {strides = array<i32>} : memref<8x128xf32, #tpu.memory_space<vmem>>, vector<8x128xf32>,
    } else {
    }
    %c0 = arith.constant 0 : index
    %c0_1 = arith.constant 0 : index
    %3 = vector.load %arg3[%c0, %c0_1] : memref<512x128xbf16, #tpu.memory_space<vmem>>, vector<512x128xbf16>
    %c0_2 = arith.constant 0 : index
    %c0_3 = arith.constant 0 : index
    %4 = vector.load %arg16[%c0_2, %c0_3] : memref<8x128xf32, #tpu.memory_space<vmem>>, vector<8x128xf32>
    %c0_4 = arith.constant 0 : index
    %c0_5 = arith.constant 0 : index
    %5 = vector.load %arg1[%c0_4, %c0_5] : memref<8x512xf32, #tpu.memory_space<vmem>>, vector<8x512xf32>
    %6 = arith.truncf %5 : vector<8x512xf32> to vector<8x512xbf16>
    %cst = arith.constant dense<0.000000e+00> : vector<8x128xf32>
    %7 = tpu.matmul %6, %3, %cst {dimension_numbers = #tpu.dot_dimension_numbers<[1], [0], [0], [1], [0, 0, 1, 1], [], []>} : vector<8x512xbf16>, vector<512x128xbf16>, vector<8x128xf32> -> vector<8x128xf32>
    %8 = arith.addf %4, %7 : vector<8x128xf32>
    %c0_6 = arith.constant 0 : index
    %c0_7 = arith.constant 0 : index
    %9 = vector.load %arg16[%c0_6, %c0_7] : memref<8x128xf32, #tpu.memory_space<vmem>>, vector<8x128xf32>
    tpu.vector_store %arg16[%c0_6, %c0_7], %8 {strides = array<i32>} : memref<8x128xf32, #tpu.memory_space<vmem>>, vector<8x128xf32>,
    %c0_8 = arith.constant 0 : index
    %c0_9 = arith.constant 0 : index
    %10 = vector.load %arg17[%c0_8, %c0_9] : memref<8x128xf32, #tpu.memory_space<vmem>>, vector<8x128xf32>
    %c0_10 = arith.constant 0 : index
    %c0_11 = arith.constant 0 : index
    %11 = vector.load %arg2[%c0_10, %c0_11] : memref<8x512xf32, #tpu.memory_space<vmem>>, vector<8x512xf32>
    %12 = arith.truncf %11 : vector<8x512xf32> to vector<8x512xbf16>
    %cst_12 = arith.constant dense<0.000000e+00> : vector<8x128xf32>
    %13 = tpu.matmul %12, %3, %cst_12 {dimension_numbers = #tpu.dot_dimension_numbers<[1], [0], [0], [1], [0, 0, 1, 1], [], []>} : vector<8x512xbf16>, vector<512x128xbf16>, vector<8x128xf32> -> vector<8x128xf32>
    %14 = arith.addf %10, %13 : vector<8x128xf32>
    %c0_13 = arith.constant 0 : index
    %c0_14 = arith.constant 0 : index
    %15 = vector.load %arg17[%c0_13, %c0_14] : memref<8x128xf32, #tpu.memory_space<vmem>>, vector<8x128xf32>
    tpu.vector_store %arg17[%c0_13, %c0_14], %14 {strides = array<i32>} : memref<8x128xf32, #tpu.memory_space<vmem>>, vector<8x128xf32>,
    %c1_i32 = arith.constant 1 : i32
    %16 = arith.cmpi eq, %arg0, %c1_i32 : i32
    %17 = arith.extui %16 : i1 to i32
    %c0_i32_15 = arith.constant 0 : i32
    %18 = arith.cmpi ne, %17, %c0_i32_15 : i32
    scf.if %18 {
      %c0_16 = arith.constant 0 : index
      %c0_17 = arith.constant 0 : index
      %19 = vector.load %arg16[%c0_16, %c0_17] : memref<8x128xf32, #tpu.memory_space<vmem>>, vector<8x128xf32>
      %c0_18 = arith.constant 0 : index
      %c0_19 = arith.constant 0 : index
      %20 = vector.load %arg4[%c0_18, %c0_19] : memref<1x128xf32, #tpu.memory_space<vmem>>, vector<1x128xf32>
      %21 = vector.broadcast %20 : vector<1x128xf32> to vector<8x128xf32>
      %22 = arith.addf %19, %21 : vector<8x128xf32>
      %c0_20 = arith.constant 0 : index
      %c0_21 = arith.constant 0 : index
      %23 = vector.load %arg6[%c0_20, %c0_21] : memref<3x256xf32, #tpu.memory_space<vmem>>, vector<1x256xf32>
      %c1 = arith.constant 1 : index
      %c0_22 = arith.constant 0 : index
      %24 = vector.load %arg6[%c1, %c0_22] : memref<3x256xf32, #tpu.memory_space<vmem>>, vector<1x256xf32>
      %c2 = arith.constant 2 : index
      %c0_23 = arith.constant 0 : index
      %25 = vector.load %arg6[%c2, %c0_23] : memref<3x256xf32, #tpu.memory_space<vmem>>, vector<1x256xf32>
      %26 = arith.truncf %22 : vector<8x128xf32> to vector<8x128xbf16>
      %c0_24 = arith.constant 0 : index
      %c0_25 = arith.constant 0 : index
      %27 = vector.load %arg5[%c0_24, %c0_25] : memref<128x256xbf16, #tpu.memory_space<vmem>>, vector<128x256xbf16>
      %cst_26 = arith.constant dense<0.000000e+00> : vector<8x256xf32>
      %28 = tpu.matmul %26, %27, %cst_26 {dimension_numbers = #tpu.dot_dimension_numbers<[1], [0], [0], [1], [0, 0, 1, 1], [], []>} : vector<8x128xbf16>, vector<128x256xbf16>, vector<8x256xf32> -> vector<8x256xf32>
      %29 = vector.broadcast %23 : vector<1x256xf32> to vector<8x256xf32>
      %30 = arith.addf %28, %29 : vector<8x256xf32>
      %cst_27 = arith.constant dense<0.000000e+00> : vector<256xf32>
      %31 = vector.multi_reduction <add>, %30, %cst_27 [0] : vector<8x256xf32> to vector<256xf32>
      %32 = vector.shape_cast %31 : vector<256xf32> to vector<1x256xf32>
      %cst_28 = arith.constant 8.000000e+00 : f32
      %33 = vector.broadcast %cst_28 : f32 to vector<1x256xf32>
      %34 = arith.divf %32, %33 : vector<1x256xf32>
      %35 = vector.broadcast %34 : vector<1x256xf32> to vector<8x256xf32>
      %36 = arith.subf %30, %35 : vector<8x256xf32>
      %37 = arith.mulf %36, %36 : vector<8x256xf32>
      %cst_29 = arith.constant dense<0.000000e+00> : vector<256xf32>
      %38 = vector.multi_reduction <add>, %37, %cst_29 [0] : vector<8x256xf32> to vector<256xf32>
      %39 = vector.shape_cast %38 : vector<256xf32> to vector<1x256xf32>
      %cst_30 = arith.constant 8.000000e+00 : f32
      %40 = vector.broadcast %cst_30 : f32 to vector<1x256xf32>
      %41 = arith.divf %39, %40 : vector<1x256xf32>
      %cst_31 = arith.constant 9.99999974E-6 : f32
      %42 = vector.broadcast %cst_31 : f32 to vector<1x256xf32>
      %43 = arith.addf %41, %42 : vector<1x256xf32>
      %44 = math.rsqrt %43 : vector<1x256xf32>
      %45 = vector.broadcast %44 : vector<1x256xf32> to vector<8x256xf32>
      %46 = arith.mulf %36, %45 : vector<8x256xf32>
      %47 = vector.broadcast %24 : vector<1x256xf32> to vector<8x256xf32>
      %48 = arith.mulf %46, %47 : vector<8x256xf32>
      %49 = vector.broadcast %25 : vector<1x256xf32> to vector<8x256xf32>
      %50 = arith.addf %48, %49 : vector<8x256xf32>
      %cst_32 = arith.constant 0.000000e+00 : f32
      %51 = vector.broadcast %cst_32 : f32 to vector<8x256xf32>
      %52 = arith.maximumf %50, %51 : vector<8x256xf32>
      %c0_33 = arith.constant 0 : index
      %c0_34 = arith.constant 0 : index
      %53 = vector.load %arg8[%c0_33, %c0_34] : memref<3x256xf32, #tpu.memory_space<vmem>>, vector<1x256xf32>
      %c1_35 = arith.constant 1 : index
      %c0_36 = arith.constant 0 : index
      %54 = vector.load %arg8[%c1_35, %c0_36] : memref<3x256xf32, #tpu.memory_space<vmem>>, vector<1x256xf32>
      %c2_37 = arith.constant 2 : index
      %c0_38 = arith.constant 0 : index
      %55 = vector.load %arg8[%c2_37, %c0_38] : memref<3x256xf32, #tpu.memory_space<vmem>>, vector<1x256xf32>
      %56 = arith.truncf %52 : vector<8x256xf32> to vector<8x256xbf16>
      %c0_39 = arith.constant 0 : index
      %c0_40 = arith.constant 0 : index
      %57 = vector.load %arg7[%c0_39, %c0_40] : memref<256x256xbf16, #tpu.memory_space<vmem>>, vector<256x256xbf16>
      %cst_41 = arith.constant dense<0.000000e+00> : vector<8x256xf32>
      %58 = tpu.matmul %56, %57, %cst_41 {dimension_numbers = #tpu.dot_dimension_numbers<[1], [0], [0], [1], [0, 0, 1, 1], [], []>} : vector<8x256xbf16>, vector<256x256xbf16>, vector<8x256xf32> -> vector<8x256xf32>
      %59 = vector.broadcast %53 : vector<1x256xf32> to vector<8x256xf32>
      %60 = arith.addf %58, %59 : vector<8x256xf32>
      %cst_42 = arith.constant dense<0.000000e+00> : vector<256xf32>
      %61 = vector.multi_reduction <add>, %60, %cst_42 [0] : vector<8x256xf32> to vector<256xf32>
      %62 = vector.shape_cast %61 : vector<256xf32> to vector<1x256xf32>
      %cst_43 = arith.constant 8.000000e+00 : f32
      %63 = vector.broadcast %cst_43 : f32 to vector<1x256xf32>
      %64 = arith.divf %62, %63 : vector<1x256xf32>
      %65 = vector.broadcast %64 : vector<1x256xf32> to vector<8x256xf32>
      %66 = arith.subf %60, %65 : vector<8x256xf32>
      %67 = arith.mulf %66, %66 : vector<8x256xf32>
      %cst_44 = arith.constant dense<0.000000e+00> : vector<256xf32>
      %68 = vector.multi_reduction <add>, %67, %cst_44 [0] : vector<8x256xf32> to vector<256xf32>
      %69 = vector.shape_cast %68 : vector<256xf32> to vector<1x256xf32>
      %cst_45 = arith.constant 8.000000e+00 : f32
      %70 = vector.broadcast %cst_45 : f32 to vector<1x256xf32>
      %71 = arith.divf %69, %70 : vector<1x256xf32>
      %cst_46 = arith.constant 9.99999974E-6 : f32
      %72 = vector.broadcast %cst_46 : f32 to vector<1x256xf32>
      %73 = arith.addf %71, %72 : vector<1x256xf32>
      %74 = math.rsqrt %73 : vector<1x256xf32>
      %75 = vector.broadcast %74 : vector<1x256xf32> to vector<8x256xf32>
      %76 = arith.mulf %66, %75 : vector<8x256xf32>
      %77 = vector.broadcast %54 : vector<1x256xf32> to vector<8x256xf32>
      %78 = arith.mulf %76, %77 : vector<8x256xf32>
      %79 = vector.broadcast %55 : vector<1x256xf32> to vector<8x256xf32>
      %80 = arith.addf %78, %79 : vector<8x256xf32>
      %cst_47 = arith.constant 0.000000e+00 : f32
      %81 = vector.broadcast %cst_47 : f32 to vector<8x256xf32>
      %82 = arith.maximumf %80, %81 : vector<8x256xf32>
      %c0_48 = arith.constant 0 : index
      %c0_49 = arith.constant 0 : index
      %83 = vector.load %arg10[%c0_48, %c0_49] : memref<3x128xf32, #tpu.memory_space<vmem>>, vector<1x128xf32>
      %c1_50 = arith.constant 1 : index
      %c0_51 = arith.constant 0 : index
      %84 = vector.load %arg10[%c1_50, %c0_51] : memref<3x128xf32, #tpu.memory_space<vmem>>, vector<1x128xf32>
      %c2_52 = arith.constant 2 : index
      %c0_53 = arith.constant 0 : index
      %85 = vector.load %arg10[%c2_52, %c0_53] : memref<3x128xf32, #tpu.memory_space<vmem>>, vector<1x128xf32>
      %86 = arith.truncf %82 : vector<8x256xf32> to vector<8x256xbf16>
      %c0_54 = arith.constant 0 : index
      %c0_55 = arith.constant 0 : index
      %87 = vector.load %arg9[%c0_54, %c0_55] : memref<256x128xbf16, #tpu.memory_space<vmem>>, vector<256x128xbf16>
      %cst_56 = arith.constant dense<0.000000e+00> : vector<8x128xf32>
      %88 = tpu.matmul %86, %87, %cst_56 {dimension_numbers = #tpu.dot_dimension_numbers<[1], [0], [0], [1], [0, 0, 1, 1], [], []>} : vector<8x256xbf16>, vector<256x128xbf16>, vector<8x128xf32> -> vector<8x128xf32>
      %89 = vector.broadcast %83 : vector<1x128xf32> to vector<8x128xf32>
      %90 = arith.addf %88, %89 : vector<8x128xf32>
      %cst_57 = arith.constant dense<0.000000e+00> : vector<128xf32>
      %91 = vector.multi_reduction <add>, %90, %cst_57 [0] : vector<8x128xf32> to vector<128xf32>
      %92 = vector.shape_cast %91 : vector<128xf32> to vector<1x128xf32>
      %cst_58 = arith.constant 8.000000e+00 : f32
      %93 = vector.broadcast %cst_58 : f32 to vector<1x128xf32>
      %94 = arith.divf %92, %93 : vector<1x128xf32>
      %95 = vector.broadcast %94 : vector<1x128xf32> to vector<8x128xf32>
      %96 = arith.subf %90, %95 : vector<8x128xf32>
      %97 = arith.mulf %96, %96 : vector<8x128xf32>
      %cst_59 = arith.constant dense<0.000000e+00> : vector<128xf32>
      %98 = vector.multi_reduction <add>, %97, %cst_59 [0] : vector<8x128xf32> to vector<128xf32>
      %99 = vector.shape_cast %98 : vector<128xf32> to vector<1x128xf32>
      %cst_60 = arith.constant 8.000000e+00 : f32
      %100 = vector.broadcast %cst_60 : f32 to vector<1x128xf32>
      %101 = arith.divf %99, %100 : vector<1x128xf32>
      %cst_61 = arith.constant 9.99999974E-6 : f32
      %102 = vector.broadcast %cst_61 : f32 to vector<1x128xf32>
      %103 = arith.addf %101, %102 : vector<1x128xf32>
      %104 = math.rsqrt %103 : vector<1x128xf32>
      %105 = vector.broadcast %104 : vector<1x128xf32> to vector<8x128xf32>
      %106 = arith.mulf %96, %105 : vector<8x128xf32>
      %107 = vector.broadcast %84 : vector<1x128xf32> to vector<8x128xf32>
      %108 = arith.mulf %106, %107 : vector<8x128xf32>
      %109 = vector.broadcast %85 : vector<1x128xf32> to vector<8x128xf32>
      %110 = arith.addf %108, %109 : vector<8x128xf32>
      %c0_62 = arith.constant 0 : index
      %c0_63 = arith.constant 0 : index
      %111 = vector.load %arg12[%c0_62, %c0_63] : memref<3x256xf32, #tpu.memory_space<vmem>>, vector<1x256xf32>
      %c1_64 = arith.constant 1 : index
      %c0_65 = arith.constant 0 : index
      %112 = vector.load %arg12[%c1_64, %c0_65] : memref<3x256xf32, #tpu.memory_space<vmem>>, vector<1x256xf32>
      %c2_66 = arith.constant 2 : index
      %c0_67 = arith.constant 0 : index
      %113 = vector.load %arg12[%c2_66, %c0_67] : memref<3x256xf32, #tpu.memory_space<vmem>>, vector<1x256xf32>
      %114 = arith.truncf %110 : vector<8x128xf32> to vector<8x128xbf16>
      %c0_68 = arith.constant 0 : index
      %c0_69 = arith.constant 0 : index
      %115 = vector.load %arg11[%c0_68, %c0_69] : memref<128x256xbf16, #tpu.memory_space<vmem>>, vector<128x256xbf16>
      %cst_70 = arith.constant dense<0.000000e+00> : vector<8x256xf32>
      %116 = tpu.matmul %114, %115, %cst_70 {dimension_numbers = #tpu.dot_dimension_numbers<[1], [0], [0], [1], [0, 0, 1, 1], [], []>} : vector<8x128xbf16>, vector<128x256xbf16>, vector<8x256xf32> -> vector<8x256xf32>
      %117 = vector.broadcast %111 : vector<1x256xf32> to vector<8x256xf32>
      %118 = arith.addf %116, %117 : vector<8x256xf32>
      %cst_71 = arith.constant dense<0.000000e+00> : vector<256xf32>
      %119 = vector.multi_reduction <add>, %118, %cst_71 [0] : vector<8x256xf32> to vector<256xf32>
      %120 = vector.shape_cast %119 : vector<256xf32> to vector<1x256xf32>
      %cst_72 = arith.constant 8.000000e+00 : f32
      %121 = vector.broadcast %cst_72 : f32 to vector<1x256xf32>
      %122 = arith.divf %120, %121 : vector<1x256xf32>
      %123 = vector.broadcast %122 : vector<1x256xf32> to vector<8x256xf32>
      %124 = arith.subf %118, %123 : vector<8x256xf32>
      %125 = arith.mulf %124, %124 : vector<8x256xf32>
      %cst_73 = arith.constant dense<0.000000e+00> : vector<256xf32>
      %126 = vector.multi_reduction <add>, %125, %cst_73 [0] : vector<8x256xf32> to vector<256xf32>
      %127 = vector.shape_cast %126 : vector<256xf32> to vector<1x256xf32>
      %cst_74 = arith.constant 8.000000e+00 : f32
      %128 = vector.broadcast %cst_74 : f32 to vector<1x256xf32>
      %129 = arith.divf %127, %128 : vector<1x256xf32>
      %cst_75 = arith.constant 9.99999974E-6 : f32
      %130 = vector.broadcast %cst_75 : f32 to vector<1x256xf32>
      %131 = arith.addf %129, %130 : vector<1x256xf32>
      %132 = math.rsqrt %131 : vector<1x256xf32>
      %133 = vector.broadcast %132 : vector<1x256xf32> to vector<8x256xf32>
      %134 = arith.mulf %124, %133 : vector<8x256xf32>
      %135 = vector.broadcast %112 : vector<1x256xf32> to vector<8x256xf32>
      %136 = arith.mulf %134, %135 : vector<8x256xf32>
      %137 = vector.broadcast %113 : vector<1x256xf32> to vector<8x256xf32>
      %138 = arith.addf %136, %137 : vector<8x256xf32>
      %cst_76 = arith.constant 0.000000e+00 : f32
      %139 = vector.broadcast %cst_76 : f32 to vector<8x256xf32>
      %140 = arith.maximumf %138, %139 : vector<8x256xf32>
      %c0_77 = arith.constant 0 : index
      %c0_78 = arith.constant 0 : index
      %141 = vector.load %arg14[%c0_77, %c0_78] : memref<1x128xf32, #tpu.memory_space<vmem>>, vector<1x128xf32>
      %142 = arith.truncf %140 : vector<8x256xf32> to vector<8x256xbf16>
      %c0_79 = arith.constant 0 : index
      %c0_80 = arith.constant 0 : index
      %143 = vector.load %arg13[%c0_79, %c0_80] : memref<256x128xbf16, #tpu.memory_space<vmem>>, vector<256x128xbf16>
      %cst_81 = arith.constant dense<0.000000e+00> : vector<8x128xf32>
      %144 = tpu.matmul %142, %143, %cst_81 {dimension_numbers = #tpu.dot_dimension_numbers<[1], [0], [0], [1], [0, 0, 1, 1], [], []>} : vector<8x256xbf16>, vector<256x128xbf16>, vector<8x128xf32> -> vector<8x128xf32>
      %145 = vector.broadcast %141 : vector<1x128xf32> to vector<8x128xf32>
      %146 = arith.addf %144, %145 : vector<8x128xf32>
      %c0_82 = arith.constant 0 : index
      %c0_83 = arith.constant 0 : index
      %147 = vector.load %arg17[%c0_82, %c0_83] : memref<8x128xf32, #tpu.memory_space<vmem>>, vector<8x128xf32>
      %c0_84 = arith.constant 0 : index
      %c0_85 = arith.constant 0 : index
      %148 = vector.load %arg4[%c0_84, %c0_85] : memref<1x128xf32, #tpu.memory_space<vmem>>, vector<1x128xf32>
      %149 = vector.broadcast %148 : vector<1x128xf32> to vector<8x128xf32>
      %150 = arith.addf %147, %149 : vector<8x128xf32>
      %c0_86 = arith.constant 0 : index
      %c0_87 = arith.constant 0 : index
      %151 = vector.load %arg6[%c0_86, %c0_87] : memref<3x256xf32, #tpu.memory_space<vmem>>, vector<1x256xf32>
      %c1_88 = arith.constant 1 : index
      %c0_89 = arith.constant 0 : index
      %152 = vector.load %arg6[%c1_88, %c0_89] : memref<3x256xf32, #tpu.memory_space<vmem>>, vector<1x256xf32>
      %c2_90 = arith.constant 2 : index
      %c0_91 = arith.constant 0 : index
      %153 = vector.load %arg6[%c2_90, %c0_91] : memref<3x256xf32, #tpu.memory_space<vmem>>, vector<1x256xf32>
      %154 = arith.truncf %150 : vector<8x128xf32> to vector<8x128xbf16>
      %c0_92 = arith.constant 0 : index
      %c0_93 = arith.constant 0 : index
      %155 = vector.load %arg5[%c0_92, %c0_93] : memref<128x256xbf16, #tpu.memory_space<vmem>>, vector<128x256xbf16>
      %cst_94 = arith.constant dense<0.000000e+00> : vector<8x256xf32>
      %156 = tpu.matmul %154, %155, %cst_94 {dimension_numbers = #tpu.dot_dimension_numbers<[1], [0], [0], [1], [0, 0, 1, 1], [], []>} : vector<8x128xbf16>, vector<128x256xbf16>, vector<8x256xf32> -> vector<8x256xf32>
      %157 = vector.broadcast %151 : vector<1x256xf32> to vector<8x256xf32>
      %158 = arith.addf %156, %157 : vector<8x256xf32>
      %cst_95 = arith.constant dense<0.000000e+00> : vector<256xf32>
      %159 = vector.multi_reduction <add>, %158, %cst_95 [0] : vector<8x256xf32> to vector<256xf32>
      %160 = vector.shape_cast %159 : vector<256xf32> to vector<1x256xf32>
      %cst_96 = arith.constant 8.000000e+00 : f32
      %161 = vector.broadcast %cst_96 : f32 to vector<1x256xf32>
      %162 = arith.divf %160, %161 : vector<1x256xf32>
      %163 = vector.broadcast %162 : vector<1x256xf32> to vector<8x256xf32>
      %164 = arith.subf %158, %163 : vector<8x256xf32>
      %165 = arith.mulf %164, %164 : vector<8x256xf32>
      %cst_97 = arith.constant dense<0.000000e+00> : vector<256xf32>
      %166 = vector.multi_reduction <add>, %165, %cst_97 [0] : vector<8x256xf32> to vector<256xf32>
      %167 = vector.shape_cast %166 : vector<256xf32> to vector<1x256xf32>
      %cst_98 = arith.constant 8.000000e+00 : f32
      %168 = vector.broadcast %cst_98 : f32 to vector<1x256xf32>
      %169 = arith.divf %167, %168 : vector<1x256xf32>
      %cst_99 = arith.constant 9.99999974E-6 : f32
      %170 = vector.broadcast %cst_99 : f32 to vector<1x256xf32>
      %171 = arith.addf %169, %170 : vector<1x256xf32>
      %172 = math.rsqrt %171 : vector<1x256xf32>
      %173 = vector.broadcast %172 : vector<1x256xf32> to vector<8x256xf32>
      %174 = arith.mulf %164, %173 : vector<8x256xf32>
      %175 = vector.broadcast %152 : vector<1x256xf32> to vector<8x256xf32>
      %176 = arith.mulf %174, %175 : vector<8x256xf32>
      %177 = vector.broadcast %153 : vector<1x256xf32> to vector<8x256xf32>
      %178 = arith.addf %176, %177 : vector<8x256xf32>
      %cst_100 = arith.constant 0.000000e+00 : f32
      %179 = vector.broadcast %cst_100 : f32 to vector<8x256xf32>
      %180 = arith.maximumf %178, %179 : vector<8x256xf32>
      %c0_101 = arith.constant 0 : index
      %c0_102 = arith.constant 0 : index
      %181 = vector.load %arg8[%c0_101, %c0_102] : memref<3x256xf32, #tpu.memory_space<vmem>>, vector<1x256xf32>
      %c1_103 = arith.constant 1 : index
      %c0_104 = arith.constant 0 : index
      %182 = vector.load %arg8[%c1_103, %c0_104] : memref<3x256xf32, #tpu.memory_space<vmem>>, vector<1x256xf32>
      %c2_105 = arith.constant 2 : index
      %c0_106 = arith.constant 0 : index
      %183 = vector.load %arg8[%c2_105, %c0_106] : memref<3x256xf32, #tpu.memory_space<vmem>>, vector<1x256xf32>
      %184 = arith.truncf %180 : vector<8x256xf32> to vector<8x256xbf16>
      %c0_107 = arith.constant 0 : index
      %c0_108 = arith.constant 0 : index
      %185 = vector.load %arg7[%c0_107, %c0_108] : memref<256x256xbf16, #tpu.memory_space<vmem>>, vector<256x256xbf16>
      %cst_109 = arith.constant dense<0.000000e+00> : vector<8x256xf32>
      %186 = tpu.matmul %184, %185, %cst_109 {dimension_numbers = #tpu.dot_dimension_numbers<[1], [0], [0], [1], [0, 0, 1, 1], [], []>} : vector<8x256xbf16>, vector<256x256xbf16>, vector<8x256xf32> -> vector<8x256xf32>
      %187 = vector.broadcast %181 : vector<1x256xf32> to vector<8x256xf32>
      %188 = arith.addf %186, %187 : vector<8x256xf32>
      %cst_110 = arith.constant dense<0.000000e+00> : vector<256xf32>
      %189 = vector.multi_reduction <add>, %188, %cst_110 [0] : vector<8x256xf32> to vector<256xf32>
      %190 = vector.shape_cast %189 : vector<256xf32> to vector<1x256xf32>
      %cst_111 = arith.constant 8.000000e+00 : f32
      %191 = vector.broadcast %cst_111 : f32 to vector<1x256xf32>
      %192 = arith.divf %190, %191 : vector<1x256xf32>
      %193 = vector.broadcast %192 : vector<1x256xf32> to vector<8x256xf32>
      %194 = arith.subf %188, %193 : vector<8x256xf32>
      %195 = arith.mulf %194, %194 : vector<8x256xf32>
      %cst_112 = arith.constant dense<0.000000e+00> : vector<256xf32>
      %196 = vector.multi_reduction <add>, %195, %cst_112 [0] : vector<8x256xf32> to vector<256xf32>
      %197 = vector.shape_cast %196 : vector<256xf32> to vector<1x256xf32>
      %cst_113 = arith.constant 8.000000e+00 : f32
      %198 = vector.broadcast %cst_113 : f32 to vector<1x256xf32>
      %199 = arith.divf %197, %198 : vector<1x256xf32>
      %cst_114 = arith.constant 9.99999974E-6 : f32
      %200 = vector.broadcast %cst_114 : f32 to vector<1x256xf32>
      %201 = arith.addf %199, %200 : vector<1x256xf32>
      %202 = math.rsqrt %201 : vector<1x256xf32>
      %203 = vector.broadcast %202 : vector<1x256xf32> to vector<8x256xf32>
      %204 = arith.mulf %194, %203 : vector<8x256xf32>
      %205 = vector.broadcast %182 : vector<1x256xf32> to vector<8x256xf32>
      %206 = arith.mulf %204, %205 : vector<8x256xf32>
      %207 = vector.broadcast %183 : vector<1x256xf32> to vector<8x256xf32>
      %208 = arith.addf %206, %207 : vector<8x256xf32>
      %cst_115 = arith.constant 0.000000e+00 : f32
      %209 = vector.broadcast %cst_115 : f32 to vector<8x256xf32>
      %210 = arith.maximumf %208, %209 : vector<8x256xf32>
      %c0_116 = arith.constant 0 : index
      %c0_117 = arith.constant 0 : index
      %211 = vector.load %arg10[%c0_116, %c0_117] : memref<3x128xf32, #tpu.memory_space<vmem>>, vector<1x128xf32>
      %c1_118 = arith.constant 1 : index
      %c0_119 = arith.constant 0 : index
      %212 = vector.load %arg10[%c1_118, %c0_119] : memref<3x128xf32, #tpu.memory_space<vmem>>, vector<1x128xf32>
      %c2_120 = arith.constant 2 : index
      %c0_121 = arith.constant 0 : index
      %213 = vector.load %arg10[%c2_120, %c0_121] : memref<3x128xf32, #tpu.memory_space<vmem>>, vector<1x128xf32>
      %214 = arith.truncf %210 : vector<8x256xf32> to vector<8x256xbf16>
      %c0_122 = arith.constant 0 : index
      %c0_123 = arith.constant 0 : index
      %215 = vector.load %arg9[%c0_122, %c0_123] : memref<256x128xbf16, #tpu.memory_space<vmem>>, vector<256x128xbf16>
      %cst_124 = arith.constant dense<0.000000e+00> : vector<8x128xf32>
      %216 = tpu.matmul %214, %215, %cst_124 {dimension_numbers = #tpu.dot_dimension_numbers<[1], [0], [0], [1], [0, 0, 1, 1], [], []>} : vector<8x256xbf16>, vector<256x128xbf16>, vector<8x128xf32> -> vector<8x128xf32>
      %217 = vector.broadcast %211 : vector<1x128xf32> to vector<8x128xf32>
      %218 = arith.addf %216, %217 : vector<8x128xf32>
      %cst_125 = arith.constant dense<0.000000e+00> : vector<128xf32>
      %219 = vector.multi_reduction <add>, %218, %cst_125 [0] : vector<8x128xf32> to vector<128xf32>
      %220 = vector.shape_cast %219 : vector<128xf32> to vector<1x128xf32>
      %cst_126 = arith.constant 8.000000e+00 : f32
      %221 = vector.broadcast %cst_126 : f32 to vector<1x128xf32>
      %222 = arith.divf %220, %221 : vector<1x128xf32>
      %223 = vector.broadcast %222 : vector<1x128xf32> to vector<8x128xf32>
      %224 = arith.subf %218, %223 : vector<8x128xf32>
      %225 = arith.mulf %224, %224 : vector<8x128xf32>
      %cst_127 = arith.constant dense<0.000000e+00> : vector<128xf32>
      %226 = vector.multi_reduction <add>, %225, %cst_127 [0] : vector<8x128xf32> to vector<128xf32>
      %227 = vector.shape_cast %226 : vector<128xf32> to vector<1x128xf32>
      %cst_128 = arith.constant 8.000000e+00 : f32
      %228 = vector.broadcast %cst_128 : f32 to vector<1x128xf32>
      %229 = arith.divf %227, %228 : vector<1x128xf32>
      %cst_129 = arith.constant 9.99999974E-6 : f32
      %230 = vector.broadcast %cst_129 : f32 to vector<1x128xf32>
      %231 = arith.addf %229, %230 : vector<1x128xf32>
      %232 = math.rsqrt %231 : vector<1x128xf32>
      %233 = vector.broadcast %232 : vector<1x128xf32> to vector<8x128xf32>
      %234 = arith.mulf %224, %233 : vector<8x128xf32>
      %235 = vector.broadcast %212 : vector<1x128xf32> to vector<8x128xf32>
      %236 = arith.mulf %234, %235 : vector<8x128xf32>
      %237 = vector.broadcast %213 : vector<1x128xf32> to vector<8x128xf32>
      %238 = arith.addf %236, %237 : vector<8x128xf32>
      %c0_130 = arith.constant 0 : index
      %c0_131 = arith.constant 0 : index
      %239 = vector.load %arg12[%c0_130, %c0_131] : memref<3x256xf32, #tpu.memory_space<vmem>>, vector<1x256xf32>
      %c1_132 = arith.constant 1 : index
      %c0_133 = arith.constant 0 : index
      %240 = vector.load %arg12[%c1_132, %c0_133] : memref<3x256xf32, #tpu.memory_space<vmem>>, vector<1x256xf32>
      %c2_134 = arith.constant 2 : index
      %c0_135 = arith.constant 0 : index
      %241 = vector.load %arg12[%c2_134, %c0_135] : memref<3x256xf32, #tpu.memory_space<vmem>>, vector<1x256xf32>
      %242 = arith.truncf %238 : vector<8x128xf32> to vector<8x128xbf16>
      %c0_136 = arith.constant 0 : index
      %c0_137 = arith.constant 0 : index
      %243 = vector.load %arg11[%c0_136, %c0_137] : memref<128x256xbf16, #tpu.memory_space<vmem>>, vector<128x256xbf16>
      %cst_138 = arith.constant dense<0.000000e+00> : vector<8x256xf32>
      %244 = tpu.matmul %242, %243, %cst_138 {dimension_numbers = #tpu.dot_dimension_numbers<[1], [0], [0], [1], [0, 0, 1, 1], [], []>} : vector<8x128xbf16>, vector<128x256xbf16>, vector<8x256xf32> -> vector<8x256xf32>
      %245 = vector.broadcast %239 : vector<1x256xf32> to vector<8x256xf32>
      %246 = arith.addf %244, %245 : vector<8x256xf32>
      %cst_139 = arith.constant dense<0.000000e+00> : vector<256xf32>
      %247 = vector.multi_reduction <add>, %246, %cst_139 [0] : vector<8x256xf32> to vector<256xf32>
      %248 = vector.shape_cast %247 : vector<256xf32> to vector<1x256xf32>
      %cst_140 = arith.constant 8.000000e+00 : f32
      %249 = vector.broadcast %cst_140 : f32 to vector<1x256xf32>
      %250 = arith.divf %248, %249 : vector<1x256xf32>
      %251 = vector.broadcast %250 : vector<1x256xf32> to vector<8x256xf32>
      %252 = arith.subf %246, %251 : vector<8x256xf32>
      %253 = arith.mulf %252, %252 : vector<8x256xf32>
      %cst_141 = arith.constant dense<0.000000e+00> : vector<256xf32>
      %254 = vector.multi_reduction <add>, %253, %cst_141 [0] : vector<8x256xf32> to vector<256xf32>
      %255 = vector.shape_cast %254 : vector<256xf32> to vector<1x256xf32>
      %cst_142 = arith.constant 8.000000e+00 : f32
      %256 = vector.broadcast %cst_142 : f32 to vector<1x256xf32>
      %257 = arith.divf %255, %256 : vector<1x256xf32>
      %cst_143 = arith.constant 9.99999974E-6 : f32
      %258 = vector.broadcast %cst_143 : f32 to vector<1x256xf32>
      %259 = arith.addf %257, %258 : vector<1x256xf32>
      %260 = math.rsqrt %259 : vector<1x256xf32>
      %261 = vector.broadcast %260 : vector<1x256xf32> to vector<8x256xf32>
      %262 = arith.mulf %252, %261 : vector<8x256xf32>
      %263 = vector.broadcast %240 : vector<1x256xf32> to vector<8x256xf32>
      %264 = arith.mulf %262, %263 : vector<8x256xf32>
      %265 = vector.broadcast %241 : vector<1x256xf32> to vector<8x256xf32>
      %266 = arith.addf %264, %265 : vector<8x256xf32>
      %cst_144 = arith.constant 0.000000e+00 : f32
      %267 = vector.broadcast %cst_144 : f32 to vector<8x256xf32>
      %268 = arith.maximumf %266, %267 : vector<8x256xf32>
      %c0_145 = arith.constant 0 : index
      %c0_146 = arith.constant 0 : index
      %269 = vector.load %arg14[%c0_145, %c0_146] : memref<1x128xf32, #tpu.memory_space<vmem>>, vector<1x128xf32>
      %270 = arith.truncf %268 : vector<8x256xf32> to vector<8x256xbf16>
      %c0_147 = arith.constant 0 : index
      %c0_148 = arith.constant 0 : index
      %271 = vector.load %arg13[%c0_147, %c0_148] : memref<256x128xbf16, #tpu.memory_space<vmem>>, vector<256x128xbf16>
      %cst_149 = arith.constant dense<0.000000e+00> : vector<8x128xf32>
      %272 = tpu.matmul %270, %271, %cst_149 {dimension_numbers = #tpu.dot_dimension_numbers<[1], [0], [0], [1], [0, 0, 1, 1], [], []>} : vector<8x256xbf16>, vector<256x128xbf16>, vector<8x128xf32> -> vector<8x128xf32>
      %273 = vector.broadcast %269 : vector<1x128xf32> to vector<8x128xf32>
      %274 = arith.addf %272, %273 : vector<8x128xf32>
      %275 = arith.mulf %146, %238 : vector<8x128xf32>
      %cst_150 = arith.constant dense<0.000000e+00> : vector<8xf32>
      %276 = vector.multi_reduction <add>, %275, %cst_150 [1] : vector<8x128xf32> to vector<8xf32>
      %277 = vector.shape_cast %276 : vector<8xf32> to vector<8x1xf32>
      %278 = arith.mulf %146, %146 : vector<8x128xf32>
      %cst_151 = arith.constant dense<0.000000e+00> : vector<8xf32>
      %279 = vector.multi_reduction <add>, %278, %cst_151 [1] : vector<8x128xf32> to vector<8xf32>
      %280 = vector.shape_cast %279 : vector<8xf32> to vector<8x1xf32>
      %281 = arith.mulf %238, %238 : vector<8x128xf32>
      %cst_152 = arith.constant dense<0.000000e+00> : vector<8xf32>
      %282 = vector.multi_reduction <add>, %281, %cst_152 [1] : vector<8x128xf32> to vector<8xf32>
      %283 = vector.shape_cast %282 : vector<8xf32> to vector<8x1xf32>
      %284 = arith.mulf %280, %283 : vector<8x1xf32>
      %285 = math.sqrt %284 : vector<8x1xf32>
      %cst_153 = arith.constant 9.99999993E-9 : f32
      %286 = vector.broadcast %cst_153 : f32 to vector<8x1xf32>
      %287 = arith.maximumf %285, %286 : vector<8x1xf32>
      %288 = arith.divf %277, %287 : vector<8x1xf32>
      %cst_154 = arith.constant dense<0.000000e+00> : vector<1xf32>
      %289 = vector.multi_reduction <add>, %288, %cst_154 [0] : vector<8x1xf32> to vector<1xf32>
      %290 = vector.shape_cast %289 : vector<1xf32> to vector<1x1xf32>
      %cst_155 = arith.constant 0.000000e+00 : f32
      %291 = vector.broadcast %cst_155 : f32 to vector<1x1xf32>
      %292 = arith.subf %291, %290 : vector<1x1xf32>
      %293 = arith.mulf %274, %110 : vector<8x128xf32>
      %cst_156 = arith.constant dense<0.000000e+00> : vector<8xf32>
      %294 = vector.multi_reduction <add>, %293, %cst_156 [1] : vector<8x128xf32> to vector<8xf32>
      %295 = vector.shape_cast %294 : vector<8xf32> to vector<8x1xf32>
      %296 = arith.mulf %274, %274 : vector<8x128xf32>
      %cst_157 = arith.constant dense<0.000000e+00> : vector<8xf32>
      %297 = vector.multi_reduction <add>, %296, %cst_157 [1] : vector<8x128xf32> to vector<8xf32>
      %298 = vector.shape_cast %297 : vector<8xf32> to vector<8x1xf32>
      %299 = arith.mulf %110, %110 : vector<8x128xf32>
      %cst_158 = arith.constant dense<0.000000e+00> : vector<8xf32>
      %300 = vector.multi_reduction <add>, %299, %cst_158 [1] : vector<8x128xf32> to vector<8xf32>
      %301 = vector.shape_cast %300 : vector<8xf32> to vector<8x1xf32>
      %302 = arith.mulf %298, %301 : vector<8x1xf32>
      %303 = math.sqrt %302 : vector<8x1xf32>
      %cst_159 = arith.constant 9.99999993E-9 : f32
      %304 = vector.broadcast %cst_159 : f32 to vector<8x1xf32>
      %305 = arith.maximumf %303, %304 : vector<8x1xf32>
      %306 = arith.divf %295, %305 : vector<8x1xf32>
      %cst_160 = arith.constant dense<0.000000e+00> : vector<1xf32>
      %307 = vector.multi_reduction <add>, %306, %cst_160 [0] : vector<8x1xf32> to vector<1xf32>
      %308 = vector.shape_cast %307 : vector<1xf32> to vector<1x1xf32>
      %cst_161 = arith.constant 0.000000e+00 : f32
      %309 = vector.broadcast %cst_161 : f32 to vector<1x1xf32>
      %310 = arith.subf %309, %308 : vector<1x1xf32>
      %311 = arith.addf %292, %310 : vector<1x1xf32>
      %cst_162 = arith.constant 6.250000e-02 : f32
      %312 = vector.broadcast %cst_162 : f32 to vector<1x1xf32>
      %313 = arith.mulf %311, %312 : vector<1x1xf32>
      %cst_163 = arith.constant 1.000000e+00 : f32
      %314 = vector.broadcast %cst_163 : f32 to vector<1x128xf32>
      %315 = vector.broadcast %313 : vector<1x1xf32> to vector<1x128xf32>
      %316 = arith.mulf %315, %314 : vector<1x128xf32>
      %c0_164 = arith.constant 0 : index
      %c0_165 = arith.constant 0 : index
      %317 = vector.load %arg15[%c0_164, %c0_165] : memref<1x128xf32, #tpu.memory_space<vmem>>, vector<1x128xf32>
      tpu.vector_store %arg15[%c0_164, %c0_165], %316 {strides = array<i32>} : memref<1x128xf32, #tpu.memory_space<vmem>>, vector<1x128xf32>,
    } else {
    }
    return
  }
  func.func @transform_0(%arg0: i32) -> (i32, i32) {
    %c0_i32 = arith.constant 0 : i32
    %c0_i32_0 = arith.constant 0 : i32
    return %c0_i32, %arg0 : i32, i32
  }
  func.func @transform_1(%arg0: i32) -> (i32, i32) {
    %c0_i32 = arith.constant 0 : i32
    %c0_i32_0 = arith.constant 0 : i32
    return %c0_i32, %arg0 : i32, i32
  }
  func.func @transform_2(%arg0: i32) -> (i32, i32) {
    %c0_i32 = arith.constant 0 : i32
    %c0_i32_0 = arith.constant 0 : i32
    return %arg0, %c0_i32 : i32, i32
  }
  func.func @transform_3(%arg0: i32) -> (i32, i32) {
    %c0_i32 = arith.constant 0 : i32
    %c0_i32_0 = arith.constant 0 : i32
    %c0_i32_1 = arith.constant 0 : i32
    return %c0_i32, %c0_i32_0 : i32, i32
  }
  func.func @transform_4(%arg0: i32) -> (i32, i32) {
    %c0_i32 = arith.constant 0 : i32
    %c0_i32_0 = arith.constant 0 : i32
    %c0_i32_1 = arith.constant 0 : i32
    return %c0_i32, %c0_i32_0 : i32, i32
  }
  func.func @transform_5(%arg0: i32) -> (i32, i32) {
    %c0_i32 = arith.constant 0 : i32
    %c0_i32_0 = arith.constant 0 : i32
    %c0_i32_1 = arith.constant 0 : i32
    return %c0_i32, %c0_i32_0 : i32, i32
  }
  func.func @transform_6(%arg0: i32) -> (i32, i32) {
    %c0_i32 = arith.constant 0 : i32
    %c0_i32_0 = arith.constant 0 : i32
    %c0_i32_1 = arith.constant 0 : i32
    return %c0_i32, %c0_i32_0 : i32, i32
  }
  func.func @transform_7(%arg0: i32) -> (i32, i32) {
    %c0_i32 = arith.constant 0 : i32
    %c0_i32_0 = arith.constant 0 : i32
    %c0_i32_1 = arith.constant 0 : i32
    return %c0_i32, %c0_i32_0 : i32, i32
  }
  func.func @transform_8(%arg0: i32) -> (i32, i32) {
    %c0_i32 = arith.constant 0 : i32
    %c0_i32_0 = arith.constant 0 : i32
    %c0_i32_1 = arith.constant 0 : i32
    return %c0_i32, %c0_i32_0 : i32, i32
  }
  func.func @transform_9(%arg0: i32) -> (i32, i32) {
    %c0_i32 = arith.constant 0 : i32
    %c0_i32_0 = arith.constant 0 : i32
    %c0_i32_1 = arith.constant 0 : i32
    return %c0_i32, %c0_i32_0 : i32, i32
  }
  func.func @transform_10(%arg0: i32) -> (i32, i32) {
    %c0_i32 = arith.constant 0 : i32
    %c0_i32_0 = arith.constant 0 : i32
    %c0_i32_1 = arith.constant 0 : i32
    return %c0_i32, %c0_i32_0 : i32, i32
  }
  func.func @transform_11(%arg0: i32) -> (i32, i32) {
    %c0_i32 = arith.constant 0 : i32
    %c0_i32_0 = arith.constant 0 : i32
    %c0_i32_1 = arith.constant 0 : i32
    return %c0_i32, %c0_i32_0 : i32, i32
  }
  func.func @transform_12(%arg0: i32) -> (i32, i32) {
    %c0_i32 = arith.constant 0 : i32
    %c0_i32_0 = arith.constant 0 : i32
    %c0_i32_1 = arith.constant 0 : i32
    return %c0_i32, %c0_i32_0 : i32, i32
  }
  func.func @transform_13(%arg0: i32) -> (i32, i32) {
    %c0_i32 = arith.constant 0 : i32
    %c0_i32_0 = arith.constant 0 : i32
    %c0_i32_1 = arith.constant 0 : i32
    return %c0_i32, %c0_i32_0 : i32, i32
  }
  func.func @transform_14(%arg0: i32) -> (i32, i32) {
    %c0_i32 = arith.constant 0 : i32
    %c0_i32_0 = arith.constant 0 : i32
    %c0_i32_1 = arith.constant 0 : i32
    return %c0_i32, %c0_i32_0 : i32, i32
  }
}

</mosaic_0001>

<bundles_post_ra>
// kernel: _simsiam_forward_impl.1
= control target key start
LH: loop header
LB: loop body
LE: loop exit
PB: predicated region body
PF: predicated region fallthrough
CT: control target
= control target key end

     0   :  { %s4523_s0 = inlined_call_operand.vmem [shape: f32[8,1024], index: 0, kind: input, shape index: {}]   ;;  %s4524_s1 = inlined_call_operand.vmem [shape: f32[8,1024], index: 1, kind: input, shape index: {}]   ;;  %s4525_s2 = inlined_call_operand.vmem [shape: bf16[1024,128], index: 2, kind: input, shape index: {}]   ;;  %s4526_s3 = inlined_call_operand.vmem [shape: f32[1,128], index: 3, kind: input, shape index: {}]   ;;  %s4527_s4 = inlined_call_operand.vmem [shape: bf16[128,256], index: 4, kind: input, shape index: {}]   ;;  %s4528_s5 = inlined_call_operand.vmem [shape: f32[3,256], index: 5, kind: input, shape index: {}]   ;;  %s4529_s6 = inlined_call_operand.hbm [shape: bf16[256,256], index: 6, kind: input, shape index: {}]   ;;  %s4530_s7 = inlined_call_operand.vmem [shape: f32[3,256], index: 7, kind: input, shape index: {}]   ;;  %s4531_s8 = inlined_call_operand.hbm [shape: bf16[256,128], index: 8, kind: input, shape index: {}]   ;;  %s4532_s9 = inlined_call_operand.vmem [shape: f32[3,128], index: 9, kind: input, shape index: {}]   ;;  %s4533_s10 = inlined_call_operand.hbm [shape: bf16[128,256], index: 10, kind: input, shape index: {}]   ;;  %s4534_s11 = inlined_call_operand.hbm [shape: f32[3,256], index: 11, kind: input, shape index: {}]   ;;  %s4535_s12 = inlined_call_operand.hbm [shape: bf16[256,128], index: 12, kind: input, shape index: {}]   ;;  %s4536_s13 = inlined_call_operand.vmem [shape: f32[1,128], index: 13, kind: input, shape index: {}]   ;;  %s4537_s14 = inlined_call_operand.hbm [shape: f32[1,128], index: 14, kind: output, shape index: {}]  }
   0x1   :  { %4598 = sst [smem:[#allocation71_spill]] %s4536_s13 }
   0x2   :  { %4599 = sst [smem:[#allocation72_spill]] %s4537_s14 }
   0x3   :  { %19 = vsyncpa [#allocation5], 0 }
   0x4   :  { %20 = vsyncpa [#allocation8], 0 }
   0x5   :  { %21 = vsyncpa [#allocation11], 0 }
   0x6   :  { %22 = vsyncpa [#allocation6], 0  ;;  %s3598_s29 = smov 0  }
   0x7 LB: > { %4600 = sst [smem:[#allocation18_spill]] %s3509_s29  ;;  %s3511_s30 = smov [#allocation7]   ;;  %s3509_s29 = sphi %s3598_s29, %s28_s29  }
   0x8   : > { %s400_s15 = sshll.u32 %s3511_s30, 4  ;;  %s3604_s16 = sadd.s32 4294967295, %s3509_s29   ;;  %s3610_s15 = int_to_ptr.vmem [resolvable:$true] %s400_s15 }
   0x9   : > { %p2714_p0 = scmp.ge.s32.totalorder %s3509_s29, 1  ;;  %p363_p1 = scmp.lt.s32.totalorder %s3509_s29, 3 }
   0xa   : > { %p4542_p3 = scmp.eq.s32.totalorder %s3604_s16, 0  ;;  %s3512_s18 = smov [#allocation10]  }
   0xb   : > { %p3612_p4 = pnand %p2714_p0, %p363_p1  ;;  %s430_s19 = sshll.u32 %s3512_s18, 4  ;;  %s3618_s19 = int_to_ptr.vmem [resolvable:$true] %s430_s19 }
   0xc   : > { %s3513_s21 = smov [#allocation4]   ;;  %s3321_s25 = scalar_lea.hbm %s4531_s8, 2048 }
   0xd   : > { %s4601_s17 = scalar_select %p3612_p4, 1, 0 }
   0xe   : > { %p3076_p5 = pneg %p3612_p4  ;;  %s384_s22 = sshll.u32 %s3513_s21, 4  ;;  %s3626_s22 = int_to_ptr.vmem [resolvable:$true] %s384_s22 }
   0xf   : > { %p3322_p7 = scmp.ne.s32.totalorder %s4531_s8, %s3321_s25  ;;  %p3328_p11 = scmp.lt.u32.totalorder %s3321_s25, %s4531_s8 }
  0x10   : > { %p3622_p6 = pnand %p4542_p3, %p3076_p5 }
  0x12   : > { %p3636_p8 = pneg %p3622_p6 }
  0x14   : > { %p3324_p9 = pnand %p3636_p8, %p3322_p7 }
  0x16   : > { %p3325_p10 = pneg %p3324_p9 }
  0x18   : > { %p3330_p12 = pnand %p3328_p11, %p3325_p10 }
  0x1a   : > { %3333 = shalt.err (!%p3330_p12)
}
  0x1b   : > { %s3334_s21 = scalar_lea.vmem %s3610_s15, 2048  ;;  %p3342_p5 = scmp.lt.s32.totalorder %s3610_s15, %s3610_s15 }
  0x1c   : > { %p3335_p13 = scmp.ne.s32.totalorder %s3610_s15, %s3334_s21  ;;  %p3343_p2 = scmp.lt.s32.totalorder %s3334_s21, %s3334_s21 }
  0x1e   : > { %p3337_p0 = pnand %p3335_p13, %p3636_p8  ;;  %p3344_p7 = por %p3343_p2, %p3342_p5 }
  0x20   : > { %p3338_p1 = pneg %p3337_p0 }
  0x22   : > { %p3345_p9 = pnand %p3344_p7, %p3338_p1 }
  0x24   : > { %3348 = shalt.err (!%p3345_p9)
}
  0x25   : > { %s4540_s23 = smov 64   ;;  %s4541_s24 = smov 4  }
  0x26   : > { %3082 = dma.hbm_to_vmem [thread:$0]  (!%p3622_p6), %s4531_s8, 2048, %s3610_s15, [#allocation8], %s4540_s23, %s4540_s23, %s4541_s24  }
  0x27   : > { %s3349_s18 = scalar_lea.hbm %s4534_s11, 128 }
  0x28   : > { %p3350_p2 = scmp.ne.s32.totalorder %s4534_s11, %s3349_s18  ;;  %p3356_p12 = scmp.lt.u32.totalorder %s3349_s18, %s4534_s11 }
  0x2a   : > { %p3352_p10 = pnand %p3350_p2, %p3636_p8 }
  0x2c   : > { %p3353_p11 = pneg %p3352_p10 }
  0x2e   : > { %p3358_p13 = pnand %p3356_p12, %p3353_p11 }
  0x30   : > { %3361 = shalt.err (!%p3358_p13)
}
  0x31   : > { %s3362_s15 = scalar_lea.vmem %s3618_s19, 128  ;;  %p3370_p7 = scmp.lt.s32.totalorder %s3618_s19, %s3618_s19 }
  0x32   : > { %p3363_p0 = scmp.ne.s32.totalorder %s3618_s19, %s3362_s15  ;;  %p3371_p9 = scmp.lt.s32.totalorder %s3362_s15, %s3362_s15 }
  0x34   : > { %p3365_p1 = pnand %p3363_p0, %p3636_p8  ;;  %p3372_p2 = por %p3371_p9, %p3370_p7 }
  0x36   : > { %p3366_p5 = pneg %p3365_p1 }
  0x38   : > { %p3373_p10 = pnand %p3372_p2, %p3366_p5 }
  0x3a   : > { %3376 = shalt.err (!%p3373_p10)
}
  0x3b   : > { %3088 = dma.hbm_to_vmem [thread:$0]  (!%p3622_p6), %s4534_s11, 128, %s3618_s19, [#allocation11]  }
  0x3c   : > { %s3377_s26 = scalar_lea.hbm %s4529_s6, 4096 }
  0x3d   : > { %p3378_p11 = scmp.ne.s32.totalorder %s4529_s6, %s3377_s26  ;;  %p3384_p0 = scmp.lt.u32.totalorder %s3377_s26, %s4529_s6 }
  0x3f   : > { %p3380_p12 = pnand %p3378_p11, %p3636_p8 }
  0x41   : > { %p3381_p13 = pneg %p3380_p12 }
  0x43   : > { %p3386_p1 = pnand %p3384_p0, %p3381_p13 }
  0x45   : > { %3389 = shalt.err (!%p3386_p1)
}
  0x46   : > { %s3390_s19 = scalar_lea.vmem %s3626_s22, 4096  ;;  %p3398_p2 = scmp.lt.s32.totalorder %s3626_s22, %s3626_s22 }
  0x47   : > { %p3391_p5 = scmp.ne.s32.totalorder %s3626_s22, %s3390_s19  ;;  %p3399_p10 = scmp.lt.s32.totalorder %s3390_s19, %s3390_s19 }
  0x49   : > { %p3393_p7 = pnand %p3391_p5, %p3636_p8  ;;  %p3400_p11 = por %p3399_p10, %p3398_p2 }
  0x4b   : > { %p3394_p9 = pneg %p3393_p7 }
  0x4d   : > { %p3401_p12 = pnand %p3400_p11, %p3394_p9 }
  0x4f   : > { %3404 = shalt.err (!%p3401_p12)
}
  0x50   : > { %s3516_s15 = smov 128   ;;  %s3517_s13 = smov 8  }
  0x51   : > { %3079 = dma.hbm_to_vmem [thread:$0]  (!%p3622_p6), %s4529_s6, 4096, %s3626_s22, [#allocation5], %s3516_s15, %s3516_s15, %s3517_s13  }
  0x52   : > { %s3518_s25 = smov [#allocation9]   ;;  %s3519_s27 = smov [#allocation12]  }
  0x53   : > { %s416_s26 = sshll.u32 %s3518_s25, 4  ;;  %s440_s30 = sshll.u32 %s3519_s27, 4  ;;  %s417_s26 = int_to_ptr.vmem [resolvable:$true] %s416_s26  ;;  %s3706_s30 = int_to_ptr.vmem [resolvable:$true] %s440_s30 }
  0x54   : > { %s3405_s19 = scalar_lea.hbm %s4533_s10, 2048 }
  0x55   : > { %p3406_p13 = scmp.ne.s32.totalorder %s4533_s10, %s3405_s19  ;;  %p3412_p5 = scmp.lt.u32.totalorder %s3405_s19, %s4533_s10 }
  0x57   : > { %p3408_p0 = pnand %p3406_p13, %p3636_p8 }
  0x59   : > { %p3409_p1 = pneg %p3408_p0 }
  0x5b   : > { %p3414_p7 = pnand %p3412_p5, %p3409_p1 }
  0x5d   : > { %3417 = shalt.err (!%p3414_p7)
}
  0x5e   : > { %s3418_s29 = scalar_lea.vmem %s417_s26, 2048  ;;  %p3426_p11 = scmp.lt.s32.totalorder %s417_s26, %s417_s26 }
  0x5f   : > { %p3419_p9 = scmp.ne.s32.totalorder %s417_s26, %s3418_s29  ;;  %p3427_p12 = scmp.lt.s32.totalorder %s3418_s29, %s3418_s29 }
  0x61   : > { %p3421_p2 = pnand %p3419_p9, %p3636_p8  ;;  %p3428_p3 = por %p3427_p12, %p3426_p11 }
  0x63   : > { %p3422_p10 = pneg %p3421_p2 }
  0x65   : > { %p3429_p4 = pnand %p3428_p3, %p3422_p10 }
  0x67   : > { %3432 = shalt.err (!%p3429_p4)
}
  0x68   : > { %3085 = dma.hbm_to_vmem [thread:$0]  (!%p3622_p6), %s4533_s10, 2048, %s417_s26, [#allocation8], %s3516_s15, %s3516_s15, %s3517_s13  }
  0x69   : > { %s3433_s18 = scalar_lea.hbm %s4535_s12, 2048 }
  0x6a   : > { %p3434_p13 = scmp.ne.s32.totalorder %s4535_s12, %s3433_s18  ;;  %p3440_p3 = scmp.lt.u32.totalorder %s3433_s18, %s4535_s12 }
  0x6c   : > { %p3436_p0 = pnand %p3434_p13, %p3636_p8 }
  0x6e   : > { %p3437_p1 = pneg %p3436_p0 }
  0x70   : > { %p3442_p4 = pnand %p3440_p3, %p3437_p1 }
  0x72   : > { %3445 = shalt.err (!%p3442_p4)
}
  0x73   : > { %s3446_s15 = scalar_lea.vmem %s3706_s30, 2048  ;;  %p3454_p2 = scmp.lt.s32.totalorder %s3706_s30, %s3706_s30 }
  0x74   : > { %p3447_p5 = scmp.ne.s32.totalorder %s3706_s30, %s3446_s15  ;;  %p3455_p10 = scmp.lt.s32.totalorder %s3446_s15, %s3446_s15 }
  0x76   : > { %p3449_p7 = pnand %p3447_p5, %p3636_p8  ;;  %p3456_p11 = por %p3455_p10, %p3454_p2 }
  0x78   : > { %p3450_p9 = pneg %p3449_p7 }
  0x7a   : > { %p3457_p12 = pnand %p3456_p11, %p3450_p9 }
  0x7c   : > { %3460 = shalt.err (!%p3457_p12)
}
  0x7d   : > { %s4604_s13 = smov 4   ;;  %s4605_s26 = smov 64  }
  0x7e   : > { %3091 = dma.hbm_to_vmem [thread:$0]  (!%p3622_p6), %s4535_s12, 2048, %s3706_s30, [#allocation11], %s4605_s26, %s4605_s26, %s4604_s13  }
  0x7f   : > { %p4606_p13 = scmp.ne.s32.totalorder %s4601_s17, 0 }
  0x80   : > { %p4607_p8 = scmp.eq.s32.totalorder (!%p4606_p13), %s3604_s16, 0 }
  0x81   : > { %486 = sbr.rel (%p4606_p13) target bundleno = 2883 (0xb43), region = 76 }
  0x88   : > { %3492 = dma.done.wait (%p4607_p8), [#allocation5], 4096   ;;  %p4608_p0 = pmov %p4607_p8 }
  0x8a   : > { %3494 = vsyncadd (%p4608_p0), [#allocation5], 4294963200  ;;  %p4609_p1 = pmov %p4608_p0 }
  0x8b   : > { %p4610_p3 = pmov %p4608_p0 }
  0x8c   : > { %3496 = dma.done.wait (%p4609_p1), [#allocation8], 4096  }
  0x8d   : > { %3498 = vsyncadd (%p4610_p3), [#allocation8], 4294963200  ;;  %p4611_p4 = pmov %p4608_p0 }
  0x8e   : > { %p4612_p6 = pmov %p4608_p0 }
  0x8f   : > { %3500 = dma.done.wait (%p4611_p4), [#allocation11], 2176  }
  0x90   : > { %3502 = vsyncadd (%p4612_p6), [#allocation11], 4294965120  ;;  %s2727_s17 = sshll.u32 %s3604_s16, 2  ;;  %s2731_s20 = sshll.u32 %s3604_s16, 6 }
  0x91   : > { %p554_p5 = scmp.lt.s32.totalorder %s2727_s17, 7  ;;  %p566_p7 = scmp.lt.s32.totalorder %s2731_s20, 127 }
  0x92   : > { %p4613_p9 = scmp.ne.s32.totalorder %s3604_s16, 0 }
  0x93   : > { %s4723_s17 = smov (!%p554_p5, %s2727_s17), 7  ;;  %s4725_s20 = smov (!%p566_p7, %s2731_s20), 127 }
  0x94   : > { %s2728_s28 = sshll.u32 %s4723_s17, 3  ;;  %s2732_s19 = sshll.u32 %s4725_s20, 2  ;;  %v3520_v0 = vmov (!%p4613_p9), 0.0  }
  0x95   : > { %s3771_s25 = scalar_lea.vmem %s4523_s0, %s2728_s28  ;;  %s3776_s21 = scalar_lea.vmem %s4524_s1, %s2728_s28  ;;  %576 = vst [vmem:[#allocation2] sm:$0xff] (!%p4613_p9), %v3520_v0  ;;  %577 = vst [vmem:[#allocation3] sm:$0xff] (!%p4613_p9), %v3520_v0 }
  0x96   : > { %s3781_s15 = scalar_lea.vmem %s4525_s2, %s2732_s19  ;;  %575 = sbr.rel (%p4613_p9) target bundleno = 157 (0x9d), region = 100 }
  0x9d PF: > { %v3786_v1 = vld [vmem:[%s3781_s15 + $0x40] sm:$0xff]   ;;  %v3801_v5 = vld [vmem:[%s3781_s15 + $0x48] sm:$0xff]   ;;  %v3817_v9 = vld [vmem:[%s3781_s15 + $0x50] sm:$0xff]   ;;  %p2766_p2 = scmp.ne.s32.totalorder %s3604_s16, 1 }
  0x9e   : > { %v3789_v2 = vld [vmem:[%s3781_s15 + $0xc0] sm:$0xff]   ;;  %2876 = vmatprep.subr.bf16.mxu0 %v3786_v1  ;;  %v3805_v6 = vld [vmem:[%s3781_s15 + $0xc8] sm:$0xff]   ;;  %v3821_v10 = vld [vmem:[%s3781_s15 + $0xd0] sm:$0xff]  }
  0x9f   : > { %v3793_v3 = vld [vmem:[%s3781_s15] sm:$0xff]   ;;  %2898 = vmatprep.subr.bf16.mxu1 %v3789_v2  ;;  %v3809_v7 = vld [vmem:[%s3781_s15 + $0x8] sm:$0xff]   ;;  %v3825_v11 = vld [vmem:[%s3781_s15 + $0x10] sm:$0xff]  }
  0xa0   : > { %v3797_v4 = vld [vmem:[%s3781_s15 + $0x80] sm:$0xff]   ;;  %2877 = vmatpush3.bf16.msra.mxu0 %v3793_v3  ;;  %v3813_v8 = vld [vmem:[%s3781_s15 + $0x88] sm:$0xff]   ;;  %v3829_v12 = vld [vmem:[%s3781_s15 + $0x90] sm:$0xff]  }
  0xa1   : > { %2899 = vmatpush3.bf16.msra.mxu1 %v3797_v4  ;;  %2878 = vmatprep.subr.bf16.mxu0 %v3801_v5  ;;  %v3833_v13 = vld [vmem:[%s3781_s15 + $0x58] sm:$0xff]   ;;  %v3849_v17 = vld [vmem:[%s3781_s15 + $0x60] sm:$0xff]   ;;  %v3144_v21 = vld [vmem:[%s3781_s15 + $0x68] sm:$0xff]  }
  0xa2   : > { %2900 = vmatprep.subr.bf16.mxu1 %v3805_v6  ;;  %v3837_v14 = vld [vmem:[%s3781_s15 + $0xd8] sm:$0xff]   ;;  %v3853_v18 = vld [vmem:[%s3781_s15 + $0xe0] sm:$0xff]   ;;  %v3145_v22 = vld [vmem:[%s3781_s15 + $0xe8] sm:$0xff]  }
  0xa3   : > { %v3841_v15 = vld [vmem:[%s3781_s15 + $0x18] sm:$0xff]   ;;  %v3857_v19 = vld [vmem:[%s3781_s15 + $0x20] sm:$0xff]   ;;  %v3146_v23 = vld [vmem:[%s3781_s15 + $0x28] sm:$0xff]  }
  0xa4   : > { %2879 = vmatpush3.bf16.msra.mxu0 %v3809_v7  ;;  %v3845_v16 = vld [vmem:[%s3781_s15 + $0x98] sm:$0xff]   ;;  %v3861_v20 = vld [vmem:[%s3781_s15 + $0xa0] sm:$0xff]   ;;  %v3147_v24 = vld [vmem:[%s3781_s15 + $0xa8] sm:$0xff]  }
  0xa5   : > { %2901 = vmatpush3.bf16.msra.mxu1 %v3813_v8  ;;  %2880 = vmatprep.subr.bf16.mxu0 %v3817_v9  ;;  %v3148_v25 = vld [vmem:[%s3781_s15 + $0x70] sm:$0xff]   ;;  %v3152_v29 = vld [vmem:[%s3781_s15 + $0x78] sm:$0xff]   ;;  %v644_v33 = vld [vmem:[%s3771_s25 + $0x8] sm:$0xff] }
  0xa6   : > { %2902 = vmatprep.subr.bf16.mxu1 %v3821_v10  ;;  %v3149_v26 = vld [vmem:[%s3781_s15 + $0xf0] sm:$0xff]   ;;  %v3153_v30 = vld [vmem:[%s3781_s15 + $0xf8] sm:$0xff]   ;;  %v643_v35 = vld [vmem:[%s3771_s25] sm:$0xff]  ;;  %v648_v36 = vpack.c.bf16 %v644_v33, %v644_v33 }
  0xa7   : > { %v3150_v27 = vld [vmem:[%s3781_s15 + $0x30] sm:$0xff]   ;;  %v3154_v31 = vld [vmem:[%s3781_s15 + $0x38] sm:$0xff]   ;;  %v647_v38 = vpack.c.bf16 %v643_v35, %v643_v35  ;;  %v927_v40 = vld [vmem:[%s3776_s21 + $0x8] sm:$0xff] }
  0xa8   : > { %2881 = vmatpush3.bf16.msra.mxu0 %v3825_v11  ;;  %v3151_v28 = vld [vmem:[%s3781_s15 + $0xb0] sm:$0xff]   ;;  %v3155_v32 = vld [vmem:[%s3781_s15 + $0xb8] sm:$0xff]   ;;  %875 = vmatprep.mubr.bf16.mxu0 %v648_v36  ;;  %v931_v43 = vpack.c.bf16 %v927_v40, %v927_v40  ;;  %v926_v45 = vld [vmem:[%s3776_s21] sm:$0xff] }
  0xa9   : > { %2903 = vmatpush3.bf16.msra.mxu1 %v3829_v12  ;;  %2882 = vmatprep.subr.bf16.mxu0 %v3833_v13  ;;  %v646_v34 = vld [vmem:[%s3771_s25 + $0x18] sm:$0xff]  ;;  %v645_v39 = vld [vmem:[%s3771_s25 + $0x10] sm:$0xff]  ;;  %v930_v47 = vpack.c.bf16 %v926_v45, %v926_v45  ;;  %v642_v57 = vld [vmem:[#allocation2] sm:$0xff] }
  0xaa   : > { %2904 = vmatprep.subr.bf16.mxu1 %v3837_v14  ;;  %v650_v37 = vpack.c.bf16 %v646_v34, %v646_v34  ;;  %v929_v41 = vld [vmem:[%s3776_s21 + $0x18] sm:$0xff]  ;;  %v649_v42 = vpack.c.bf16 %v645_v39, %v645_v39  ;;  %v928_v46 = vld [vmem:[%s3776_s21 + $0x10] sm:$0xff] }
  0xab   : > { %v933_v44 = vpack.c.bf16 %v929_v41, %v929_v41  ;;  %v932_v48 = vpack.c.bf16 %v928_v46, %v928_v46 }
  0xac   : > { %2883 = vmatpush3.bf16.msra.mxu0 %v3841_v15  ;;  %915 = vmatprep.mubr.bf16.mxu1 %v650_v37 }
  0xad   : > { %2905 = vmatpush3.bf16.msra.mxu1 %v3845_v16  ;;  %2884 = vmatprep.subr.bf16.mxu0 %v3849_v17 }
  0xae   : > { %2906 = vmatprep.subr.bf16.mxu1 %v3853_v18 }
  0xb0   : > { %2885 = vmatpush3.bf16.msra.mxu0 %v3857_v19 }
  0xb1   : > { %2907 = vmatpush3.bf16.msra.mxu1 %v3861_v20  ;;  %2886 = vmatprep.subr.bf16.mxu0 %v3144_v21 }
  0xb2   : > { %2908 = vmatprep.subr.bf16.mxu1 %v3145_v22 }
  0xb4   : > { %2887 = vmatpush3.bf16.msra.mxu0 %v3146_v23 }
  0xb5   : > { %2909 = vmatpush3.bf16.msra.mxu1 %v3147_v24  ;;  %2888 = vmatprep.subr.bf16.mxu0 %v3148_v25 }
  0xb6   : > { %2910 = vmatprep.subr.bf16.mxu1 %v3149_v26 }
  0xb8   : > { %2889 = vmatpush3.bf16.msra.mxu0 %v3150_v27 }
  0xb9   : > { %2911 = vmatpush3.bf16.msra.mxu1 %v3151_v28  ;;  %2890 = vmatprep.subr.bf16.mxu0 %v3152_v29 }
  0xba   : > { %2912 = vmatprep.subr.bf16.mxu1 %v3153_v30 }
  0xbc   : > { %2891 = vmatpush3.bf16.msra.mxu0 %v3154_v31 }
  0xbd   : > { %2913 = vmatpush3.bf16.msra.mxu1 %v3155_v32  ;;  %2920 = vmatprep.subr.bf16.mxu0 %v3786_v1 }
  0xbe   : > { %2942 = vmatprep.subr.bf16.mxu1 %v3789_v2 }
  0xbf   : > { %876 = vmatmul.mubr.bf16.vlgmr.msra.gmra.mrb[0].mxu0 %v647_v38 }
  0xc0   : > { %916 = vmatmul.mubr.bf16.vlgmr.msra.gmra.mrb[0].mxu1 %v649_v42  ;;  %2921 = vmatpush3.bf16.msra.mxu0 %v3793_v3 }
  0xc1   : > { %2943 = vmatpush3.bf16.msra.mxu1 %v3797_v4  ;;  %2922 = vmatprep.subr.bf16.mxu0 %v3801_v5 }
  0xc2   : > { %2944 = vmatprep.subr.bf16.mxu1 %v3805_v6  ;;  %966 = vmatprep.mubr.bf16.mxu0 %v931_v43  ;;  %v925_v6 = vld [vmem:[#allocation3] sm:$0xff] }
  0xc3   : > { %1006 = vmatprep.mubr.bf16.mxu1 %v933_v44 }
  0xc4   : > { %2923 = vmatpush3.bf16.msra.mxu0 %v3809_v7 }
  0xc5   : > { %2945 = vmatpush3.bf16.msra.mxu1 %v3813_v8  ;;  %2924 = vmatprep.subr.bf16.mxu0 %v3817_v9 }
  0xc6   : > { %2946 = vmatprep.subr.bf16.mxu1 %v3821_v10 }
  0xc8   : > { %2925 = vmatpush3.bf16.msra.mxu0 %v3825_v11 }
  0xc9   : > { %2947 = vmatpush3.bf16.msra.mxu1 %v3829_v12  ;;  %2926 = vmatprep.subr.bf16.mxu0 %v3833_v13 }
  0xca   : > { %2948 = vmatprep.subr.bf16.mxu1 %v3837_v14 }
  0xcc   : > { %2927 = vmatpush3.bf16.msra.mxu0 %v3841_v15 }
  0xcd   : > { %2949 = vmatpush3.bf16.msra.mxu1 %v3845_v16  ;;  %2928 = vmatprep.subr.bf16.mxu0 %v3849_v17 }
  0xce   : > { %2950 = vmatprep.subr.bf16.mxu1 %v3853_v18 }
  0xd0   : > { %2929 = vmatpush3.bf16.msra.mxu0 %v3857_v19 }
  0xd1   : > { %2951 = vmatpush3.bf16.msra.mxu1 %v3861_v20  ;;  %2930 = vmatprep.subr.bf16.mxu0 %v3144_v21 }
  0xd2   : > { %2952 = vmatprep.subr.bf16.mxu1 %v3145_v22 }
  0xd4   : > { %2931 = vmatpush3.bf16.msra.mxu0 %v3146_v23 }
  0xd5   : > { %2953 = vmatpush3.bf16.msra.mxu1 %v3147_v24  ;;  %2932 = vmatprep.subr.bf16.mxu0 %v3148_v25 }
  0xd6   : > { %2954 = vmatprep.subr.bf16.mxu1 %v3149_v26 }
  0xd8   : > { %2933 = vmatpush3.bf16.msra.mxu0 %v3150_v27 }
  0xd9   : > { %2955 = vmatpush3.bf16.msra.mxu1 %v3151_v28  ;;  %2934 = vmatprep.subr.bf16.mxu0 %v3152_v29 }
  0xda   : > { %2956 = vmatprep.subr.bf16.mxu1 %v3153_v30 }
  0xdc   : > { %2935 = vmatpush3.bf16.msra.mxu0 %v3154_v31 }
  0xdd   : > { %2957 = vmatpush3.bf16.msra.mxu1 %v3155_v32 }
  0xdf   : > { %967 = vmatmul.mubr.bf16.vlgmr.msra.gmra.mrb[4].mxu0 %v930_v47 }
  0xe0   : > { %1007 = vmatmul.mubr.bf16.vlgmr.msra.gmra.mrb[4].mxu1 %v932_v48 }
 0x192   : > { %v2892_v49 = vpop.f32.mrb[0].mxu0 }
 0x193   : > { %v2914_v50 = vpop.f32.mrb[0].mxu1  ;;  %v2893_v51 = vpop.f32.mrb[1].mxu0 }
 0x194   : > { %v2915_v52 = vpop.f32.mrb[1].mxu1  ;;  %v2894_v53 = vadd.f32 %v2893_v51, %v2892_v49  ;;  %v2895_v55 = vpop.f32.mrb[2].mxu0 }
 0x195   : > { %v2916_v54 = vadd.f32 %v2915_v52, %v2914_v50  ;;  %v2917_v56 = vpop.f32.mrb[2].mxu1  ;;  %v2896_v58 = vpop.f32.mrb[3].mxu0 }
 0x196   : > { %v2918_v59 = vpop.f32.mrb[3].mxu1 }
 0x197   : > { %v918_v60 = vadd.f32 %v2916_v54, %v2894_v53 }
 0x199   : > { %v923_v61 = vadd.f32 %v918_v60, %v642_v57 }
 0x19b   : > { %924 = vst [vmem:[#allocation2] sm:$0xff] %v923_v61 }
 0x1b2   : > { %v2936_v62 = vpop.f32.mrb[4].mxu0 }
 0x1b3   : > { %v2958_v63 = vpop.f32.mrb[4].mxu1  ;;  %v2937_v0 = vpop.f32.mrb[5].mxu0 }
 0x1b4   : > { %v2959_v1 = vpop.f32.mrb[5].mxu1  ;;  %v2938_v2 = vadd.f32 %v2937_v0, %v2936_v62  ;;  %v2939_v4 = vpop.f32.mrb[6].mxu0 }
 0x1b5   : > { %v2960_v3 = vadd.f32 %v2959_v1, %v2958_v63  ;;  %v2961_v5 = vpop.f32.mrb[6].mxu1  ;;  %v2940_v7 = vpop.f32.mrb[7].mxu0  ;;  %1019 = sbr.rel (%p2766_p2) target bundleno = 2852 (0xb24), region = 104 }
 0x1b6   : > { %v2962_v8 = vpop.f32.mrb[7].mxu1 }
 0x1b7   : > { %v1009_v9 = vadd.f32 %v2960_v3, %v2938_v2 }
 0x1b9   : > { %v1014_v10 = vadd.f32 %v1009_v9, %v925_v6 }
 0x1bb   : > { %1015 = vst [vmem:[#allocation3] sm:$0xff] %v1014_v10 }
 0x1bc   : > { %v3909_v11 = vld [vmem:[%s4527_s4 + $0x4] ss:$8 sps:$4 sm:$0xff]   ;;  %v3914_v12 = vld [vmem:[%s4527_s4] ss:$8 sps:$4 sm:$0xff]   ;;  %v4544_v13 = vmov 0   ;;  %v1052_v0 = vlaneseq  ;;  %s4701_s23 = sld [smem:[#allocation71_spill]] }
 0x1bd   : > { %1174 = vmatprep.mubr.bf16.mxu0 %v4544_v13  ;;  %1142 = vmatprep.subr.bf16.mxu0 %v3909_v11  ;;  %v3921_v14 = vld [vmem:[%s4527_s4 + $0x14] ss:$8 sps:$4 sm:$0xff]   ;;  %v3927_v15 = vld [vmem:[%s4527_s4 + $0x10] ss:$8 sps:$4 sm:$0xff]   ;;  %v3933_v16 = vld [vmem:[%s4527_s4 + $0x24] ss:$8 sps:$4 sm:$0xff]  }
 0x1be   : > { %1143 = vmatpush1.bf16.msra.mxu0 %v3914_v12  ;;  %v3939_v17 = vld [vmem:[%s4527_s4 + $0x20] ss:$8 sps:$4 sm:$0xff]   ;;  %v3945_v18 = vld [vmem:[%s4527_s4 + $0x34] ss:$8 sps:$4 sm:$0xff]   ;;  %v3951_v19 = vld [vmem:[%s4527_s4 + $0x30] ss:$8 sps:$4 sm:$0xff]  }
 0x1bf   : > { %1144 = vmatprep.subr.bf16.mxu0 %v3921_v14  ;;  %v3956_v20 = vld [vmem:[%s4527_s4 + $0x44] ss:$8 sps:$4 sm:$0xff]   ;;  %v3959_v21 = vld [vmem:[#allocation4 + $0x4] ss:$8 sps:$4 sm:$0xff]   ;;  %v3182_v22 = vld [vmem:[#allocation4] ss:$8 sps:$4 sm:$0xff]  }
 0x1c0   : > { %v3964_v23 = vld [vmem:[%s4527_s4 + $0x40] ss:$8 sps:$4 sm:$0xff]   ;;  %v3969_v24 = vld [vmem:[%s4527_s4 + $0x54] ss:$8 sps:$4 sm:$0xff]   ;;  %1460 = vmatprep.subr.bf16.mxu1 %v3959_v21  ;;  %v3977_v25 = vld [vmem:[%s4527_s4 + $0x50] ss:$8 sps:$4 sm:$0xff]  }
 0x1c1   : > { %1461 = vmatpush1.bf16.msra.mxu1 %v3182_v22  ;;  %v3982_v26 = vld [vmem:[%s4527_s4 + $0x64] ss:$8 sps:$4 sm:$0xff]   ;;  %v3989_v27 = vld [vmem:[%s4527_s4 + $0x60] ss:$8 sps:$4 sm:$0xff]   ;;  %v3999_v30 = vld [vmem:[%s4527_s4 + $0x74] ss:$8 sps:$4 sm:$0xff]  }
 0x1c2   : > { %1145 = vmatpush1.bf16.msra.mxu0 %v3927_v15  ;;  %v1020_v28 = vld [vmem:[#allocation2] sm:$0xff]  ;;  %v4006_v31 = vld [vmem:[%s4527_s4 + $0x70] ss:$8 sps:$4 sm:$0xff]   ;;  %v4018_v36 = vld [vmem:[#allocation4 + $0x24] ss:$8 sps:$4 sm:$0xff]   ;;  %v1053_v1 = vshrl.u32 %v1052_v0, 7 }
 0x1c3   : > { %1146 = vmatprep.subr.bf16.mxu0 %v3933_v16  ;;  %v3994_v29 = vld [vmem:[%s4526_s3] ss:$0 sm:$0xff]  ;;  %v4012_v34 = vld [vmem:[#allocation4 + $0x14] ss:$8 sps:$4 sm:$0xff]   ;;  %4616 = vst [vmem:[#allocation21_spill] sm:$0xff] %v4018_v36 }
 0x1c4   : > { %v1028_v32 = vadd.f32 %v3994_v29, %v1020_v28  ;;  %4614 = vst [vmem:[#allocation19_spill] sm:$0xff] %v4012_v34  ;;  %v4014_v35 = vld [vmem:[#allocation4 + $0x10] ss:$8 sps:$4 sm:$0xff]   ;;  %1462 = vmatprep.subr.bf16.mxu1 %v4012_v34  ;;  %v4020_v37 = vld [vmem:[#allocation4 + $0x20] ss:$8 sps:$4 sm:$0xff]   ;;  %v4102_v2 = vsub.s32 0, %v1053_v1 }
 0x1c5   : > { %4615 = vst [vmem:[#allocation20_spill] sm:$0xff] %v4014_v35  ;;  %1463 = vmatpush1.bf16.msra.mxu1 %v4014_v35  ;;  %4617 = vst [vmem:[#allocation22_spill] sm:$0xff] %v4020_v37  ;;  %v4024_v38 = vld [vmem:[#allocation4 + $0x34] ss:$8 sps:$4 sm:$0xff]   ;;  %v4026_v39 = vld [vmem:[#allocation4 + $0x30] ss:$8 sps:$4 sm:$0xff]  }
 0x1c6   : > { %1147 = vmatpush1.bf16.msra.mxu0 %v3939_v17  ;;  %v1034_v33 = vpack.c.bf16 %v1028_v32, %v1028_v32  ;;  %1464 = vmatprep.subr.bf16.mxu1 %v4018_v36  ;;  %4618 = vst [vmem:[#allocation23_spill] sm:$0xff] %v4024_v38  ;;  %4619 = vst [vmem:[#allocation24_spill] sm:$0xff] %v4026_v39  ;;  %v4030_v40 = vld [vmem:[#allocation4 + $0x44] ss:$8 sps:$4 sm:$0xff]   ;;  %v4032_v41 = vld [vmem:[#allocation4 + $0x40] ss:$8 sps:$4 sm:$0xff]  }
 0x1c7   : > { %1148 = vmatprep.subr.bf16.mxu0 %v3945_v18  ;;  %4620 = vst [vmem:[#allocation25_spill] sm:$0xff] %v4030_v40  ;;  %4621 = vst [vmem:[#allocation26_spill] sm:$0xff] %v4032_v41  ;;  %v4036_v42 = vld [vmem:[#allocation4 + $0x54] ss:$8 sps:$4 sm:$0xff]   ;;  %v4038_v43 = vld [vmem:[#allocation4 + $0x50] ss:$8 sps:$4 sm:$0xff]  }
 0x1c8   : > { %4622 = vst [vmem:[#allocation27_spill] sm:$0xff] %v4036_v42  ;;  %4623 = vst [vmem:[#allocation28_spill] sm:$0xff] %v4038_v43  ;;  %v4042_v44 = vld [vmem:[#allocation4 + $0x64] ss:$8 sps:$4 sm:$0xff]   ;;  %v4044_v45 = vld [vmem:[#allocation4 + $0x60] ss:$8 sps:$4 sm:$0xff]  }
 0x1c9   : > { %1465 = vmatpush1.bf16.msra.mxu1 %v4020_v37  ;;  %4624 = vst [vmem:[#allocation29_spill] sm:$0xff] %v4042_v44  ;;  %4625 = vst [vmem:[#allocation30_spill] sm:$0xff] %v4044_v45  ;;  %v4048_v46 = vld [vmem:[#allocation4 + $0x74] ss:$8 sps:$4 sm:$0xff]   ;;  %v4050_v47 = vld [vmem:[#allocation4 + $0x70] ss:$8 sps:$4 sm:$0xff]  }
 0x1ca   : > { %1149 = vmatpush1.bf16.msra.mxu0 %v3951_v19  ;;  %1466 = vmatprep.subr.bf16.mxu1 %v4024_v38  ;;  %4626 = vst [vmem:[#allocation31_spill] sm:$0xff] %v4048_v46  ;;  %4627 = vst [vmem:[#allocation32_spill] sm:$0xff] %v4050_v47  ;;  %v4054_v48 = vld [vmem:[#allocation4 + $0x84] ss:$8 sps:$4 sm:$0xff]   ;;  %v4056_v49 = vld [vmem:[#allocation4 + $0x80] ss:$8 sps:$4 sm:$0xff]  }
 0x1cb   : > { %1150 = vmatprep.subr.bf16.mxu0 %v3956_v20  ;;  %4628 = vst [vmem:[#allocation33_spill] sm:$0xff] %v4054_v48  ;;  %4629 = vst [vmem:[#allocation34_spill] sm:$0xff] %v4056_v49  ;;  %v4060_v50 = vld [vmem:[#allocation4 + $0x94] ss:$8 sps:$4 sm:$0xff]   ;;  %v4062_v51 = vld [vmem:[#allocation4 + $0x90] ss:$8 sps:$4 sm:$0xff]  }
 0x1cc   : > { %4630 = vst [vmem:[#allocation35_spill] sm:$0xff] %v4060_v50  ;;  %4631 = vst [vmem:[#allocation36_spill] sm:$0xff] %v4062_v51  ;;  %v4066_v52 = vld [vmem:[#allocation4 + $0xa4] ss:$8 sps:$4 sm:$0xff]   ;;  %v4068_v53 = vld [vmem:[#allocation4 + $0xa0] ss:$8 sps:$4 sm:$0xff]  }
 0x1cd   : > { %1467 = vmatpush1.bf16.msra.mxu1 %v4026_v39  ;;  %4632 = vst [vmem:[#allocation37_spill] sm:$0xff] %v4066_v52  ;;  %4633 = vst [vmem:[#allocation38_spill] sm:$0xff] %v4068_v53  ;;  %v4072_v54 = vld [vmem:[#allocation4 + $0xb4] ss:$8 sps:$4 sm:$0xff]   ;;  %v4074_v55 = vld [vmem:[#allocation4 + $0xb0] ss:$8 sps:$4 sm:$0xff]  }
 0x1ce   : > { %1151 = vmatpush1.bf16.msra.mxu0 %v3964_v23  ;;  %1468 = vmatprep.subr.bf16.mxu1 %v4030_v40  ;;  %4634 = vst [vmem:[#allocation39_spill] sm:$0xff] %v4072_v54  ;;  %4635 = vst [vmem:[#allocation40_spill] sm:$0xff] %v4074_v55  ;;  %v4078_v56 = vld [vmem:[#allocation4 + $0xc4] ss:$8 sps:$4 sm:$0xff]   ;;  %v4080_v57 = vld [vmem:[#allocation4 + $0xc0] ss:$8 sps:$4 sm:$0xff]  }
 0x1cf   : > { %1152 = vmatprep.subr.bf16.mxu0 %v3969_v24  ;;  %4636 = vst [vmem:[#allocation41_spill] sm:$0xff] %v4078_v56  ;;  %4637 = vst [vmem:[#allocation42_spill] sm:$0xff] %v4080_v57  ;;  %v4084_v58 = vld [vmem:[#allocation4 + $0xd4] ss:$8 sps:$4 sm:$0xff]   ;;  %v4086_v59 = vld [vmem:[#allocation4 + $0xd0] ss:$8 sps:$4 sm:$0xff]  }
 0x1d0   : > { %4638 = vst [vmem:[#allocation43_spill] sm:$0xff] %v4084_v58  ;;  %4639 = vst [vmem:[#allocation44_spill] sm:$0xff] %v4086_v59  ;;  %v4089_v60 = vld [vmem:[#allocation4 + $0xe4] ss:$8 sps:$4 sm:$0xff]   ;;  %v4092_v61 = vld [vmem:[#allocation4 + $0xe0] ss:$8 sps:$4 sm:$0xff]  }
 0x1d1   : > { %1469 = vmatpush1.bf16.msra.mxu1 %v4032_v41  ;;  %4640 = vst [vmem:[#allocation45_spill] sm:$0xff] %v4089_v60  ;;  %4641 = vst [vmem:[#allocation46_spill] sm:$0xff] %v4092_v61  ;;  %v4095_v62 = vld [vmem:[#allocation4 + $0xf4] ss:$8 sps:$4 sm:$0xff]   ;;  %v4098_v63 = vld [vmem:[#allocation4 + $0xf0] ss:$8 sps:$4 sm:$0xff]  }
 0x1d2   : > { %1153 = vmatpush1.bf16.msra.mxu0 %v3977_v25  ;;  %1470 = vmatprep.subr.bf16.mxu1 %v4036_v42  ;;  %4642 = vst [vmem:[#allocation47_spill] sm:$0xff] %v4095_v62  ;;  %4643 = vst [vmem:[#allocation48_spill] sm:$0xff] %v4098_v63  ;;  %v1029_v3 = vld [vmem:[%s4528_s5] ss:$4 sm:$0x3]  ;;  %v4107_v4 = vsub.s32 1, %v1053_v1 }
 0x1d3   : > { %1154 = vmatprep.subr.bf16.mxu0 %v3982_v26  ;;  %v4110_v5 = vrot.slane %v1029_v3, %v4102_v2 }
 0x1d4   : > { %v4113_v6 = vrot.slane %v1029_v3, %v4107_v4 }
 0x1d5   : > { %1471 = vmatpush1.bf16.msra.mxu1 %v4038_v43 }
 0x1d6   : > { %1155 = vmatpush1.bf16.msra.mxu0 %v3989_v27  ;;  %1472 = vmatprep.subr.bf16.mxu1 %v4042_v44 }
 0x1d7   : > { %1156 = vmatprep.subr.bf16.mxu0 %v3999_v30 }
 0x1d9   : > { %1473 = vmatpush1.bf16.msra.mxu1 %v4044_v45 }
 0x1da   : > { %1157 = vmatpush1.bf16.msra.mxu0 %v4006_v31  ;;  %1474 = vmatprep.subr.bf16.mxu1 %v4048_v46 }
 0x1dd   : > { %1175 = vmatmul.mubr.bf16.vlgmr.msra.gmra.mrb[0].mxu0 %v1034_v33  ;;  %1475 = vmatpush1.bf16.msra.mxu1 %v4050_v47 }
 0x1de   : > { %1476 = vmatprep.subr.bf16.mxu1 %v4054_v48 }
 0x1e1   : > { %1477 = vmatpush1.bf16.msra.mxu1 %v4056_v49 }
 0x1e2   : > { %1478 = vmatprep.subr.bf16.mxu1 %v4060_v50 }
 0x1e5   : > { %1479 = vmatpush1.bf16.msra.mxu1 %v4062_v51 }
 0x1e6   : > { %1480 = vmatprep.subr.bf16.mxu1 %v4066_v52 }
 0x1e9   : > { %1481 = vmatpush1.bf16.msra.mxu1 %v4068_v53 }
 0x1ea   : > { %1482 = vmatprep.subr.bf16.mxu1 %v4072_v54 }
 0x1ed   : > { %1483 = vmatpush1.bf16.msra.mxu1 %v4074_v55 }
 0x1ee   : > { %1484 = vmatprep.subr.bf16.mxu1 %v4078_v56 }
 0x1f1   : > { %1485 = vmatpush1.bf16.msra.mxu1 %v4080_v57 }
 0x1f2   : > { %1486 = vmatprep.subr.bf16.mxu1 %v4084_v58 }
 0x1f5   : > { %1487 = vmatpush1.bf16.msra.mxu1 %v4086_v59 }
 0x1f6   : > { %1488 = vmatprep.subr.bf16.mxu1 %v4089_v60 }
 0x1f9   : > { %1489 = vmatpush1.bf16.msra.mxu1 %v4092_v61 }
 0x1fa   : > { %1490 = vmatprep.subr.bf16.mxu1 %v4095_v62 }
 0x1fd   : > { %1491 = vmatpush1.bf16.msra.mxu1 %v4098_v63 }
 0x2b0   : > { %v1176_v7 = vpop.f32.mrb[0].mxu0 }
 0x2b1   : > { %v1177_v8 = vadd.f32 %v1176_v7, %v4110_v5  ;;  %v1178_v9 = vpop.f32.mrb[1].mxu0 }
 0x2b2   : > { %v1179_v10 = vadd.f32 %v1178_v9, %v4113_v6  ;;  %v1180_v22 = vpop.f32.mrb[2].mxu0 }
 0x2b3   : > { %v1183_v28 = vrot.slane %v1177_v8, 4  ;;  %v1181_v32 = vpop.f32.mrb[3].mxu0 }
 0x2b4   : > { %v1189_v33 = vrot.slane %v1179_v10, 4 }
 0x2b5   : > { %v1184_v0 = vadd.f32 %v1183_v28, %v1177_v8 }
 0x2b6   : > { %v1190_v13 = vadd.f32 %v1189_v33, %v1179_v10 }
 0x2b7   : > { %v1185_v1 = vrot.slane %v1184_v0, 2 }
 0x2b8   : > { %v1191_v63 = vrot.slane %v1190_v13, 2 }
 0x2b9   : > { %v1186_v62 = vadd.f32 %v1185_v1, %v1184_v0 }
 0x2ba   : > { %v1192_v61 = vadd.f32 %v1191_v63, %v1190_v13 }
 0x2bb   : > { %v1187_v60 = vrot.slane %v1186_v62, 1 }
 0x2bc   : > { %v1193_v59 = vrot.slane %v1192_v61, 1 }
 0x2bd   : > { %v1188_v3 = vadd.f32 %v1187_v60, %v1186_v62 }
 0x2be   : > { %v1194_v58 = vadd.f32 %v1193_v59, %v1192_v61 }
 0x2bf   : > { %v1196_v57 = vmul.f32 0.125, %v1188_v3 }
 0x2c0   : > { %v1197_v56 = vmul.f32 0.125, %v1194_v58 }
 0x2c1   : > { %v1198_v7 = vsub.f32 %v1177_v8, %v1196_v57 }
 0x2c2   : > { %v1199_v55 = vsub.f32 %v1179_v10, %v1197_v56  ;;  %v2768_v56 = vld [vmem:[%s4528_s5 + $0x1] ss:$4 sm:$0x3] }
 0x2c3   : > { %v1200_v54 = vmul.f32 %v1198_v7, %v1198_v7 }
 0x2c4   : > { %v1201_v9 = vmul.f32 %v1199_v55, %v1199_v55 }
 0x2c5   : > { %v1202_v22 = vrot.slane %v1200_v54, 4 }
 0x2c6   : > { %v1208_v53 = vrot.slane %v1201_v9, 4 }
 0x2c7   : > { %v1203_v32 = vadd.f32 %v1202_v22, %v1200_v54 }
 0x2c8   : > { %v1209_v52 = vadd.f32 %v1208_v53, %v1201_v9  ;;  %v2769_v53 = vld [vmem:[%s4528_s5 + $0x2] ss:$4 sm:$0x3] }
 0x2c9   : > { %v1204_v28 = vrot.slane %v1203_v32, 2  ;;  %v4130_v62 = vrot.slane %v2769_v53, %v4102_v2  ;;  %v4133_v10 = vrot.slane %v2769_v53, %v4107_v4  ;;  %v4165_v53 = vld [vmem:[#allocation7 + $0x20] sm:$0xff]  }
 0x2ca   : > { %v1210_v33 = vrot.slane %v1209_v52, 2 }
 0x2cb   : > { %v1205_v51 = vadd.f32 %v1204_v28, %v1203_v32  ;;  %4646 = vst [vmem:[#allocation51_spill] sm:$0xff] %v4130_v62  ;;  %4647 = vst [vmem:[#allocation52_spill] sm:$0xff] %v4133_v10 }
 0x2cc   : > { %v1211_v50 = vadd.f32 %v1210_v33, %v1209_v52  ;;  %v4124_v52 = vrot.slane %v2768_v56, %v4102_v2 }
 0x2cd   : > { %v1206_v0 = vrot.slane %v1205_v51, 1 }
 0x2ce   : > { %v1212_v13 = vrot.slane %v1211_v50, 1  ;;  %4644 = vst [vmem:[#allocation49_spill] sm:$0xff] %v4124_v52 }
 0x2cf   : > { %v1207_v63 = vadd.f32 %v1206_v0, %v1205_v51 }
 0x2d0   : > { %v1213_v1 = vadd.f32 %v1212_v13, %v1211_v50  ;;  %v4127_v50 = vrot.slane %v2768_v56, %v4107_v4  ;;  %v4163_v56 = vld [vmem:[#allocation7 + $0x60] sm:$0xff]  }
 0x2d1   : > { %v1214_v60 = vmul.f32 0.125, %v1207_v63  ;;  %v4145_v63 = vld [vmem:[#allocation7 + $0x48] sm:$0xff]  }
 0x2d2   : > { %v1215_v59 = vmul.f32 0.125, %v1213_v1  ;;  %4645 = vst [vmem:[#allocation50_spill] sm:$0xff] %v4127_v50  ;;  %v4147_v1 = vld [vmem:[#allocation7 + $0x8] sm:$0xff]  }
 0x2d3   : > { %v1216_v61 = vadd.f32 1e-05, %v1214_v60  ;;  %v4151_v60 = vld [vmem:[#allocation7 + $0x50] sm:$0xff]  }
 0x2d4   : > { %v1217_v58 = vadd.f32 1e-05, %v1215_v59  ;;  %v4153_v59 = vld [vmem:[#allocation7 + $0x10] sm:$0xff]  }
 0x2d5   : > { %3284 = vrsqrt.f32 %v1216_v61  ;;  %v4157_v61 = vld [vmem:[#allocation7 + $0x58] sm:$0xff]  }
 0x2d6   : > { %3286 = vrsqrt.f32 %v1217_v58  ;;  %v4159_v58 = vld [vmem:[#allocation7 + $0x18] sm:$0xff]  }
 0x2df   : > { %v3285_v54 = vpop.eup %3284 }
 0x2e0   : > { %v3287_v51 = vpop.eup %3286  ;;  %v1220_v57 = vmul.f32 %v3285_v54, %v1198_v7  ;;  %v4139_v7 = vld [vmem:[#allocation7 + $0x40] sm:$0xff]   ;;  %v4169_v54 = vld [vmem:[#allocation7 + $0x68] sm:$0xff]  }
 0x2e1   : > { %v1221_v8 = vmul.f32 %v3287_v51, %v1199_v55  ;;  %v4141_v55 = vld [vmem:[#allocation7] sm:$0xff]   ;;  %2964 = vmatprep.subr.bf16.mxu0 %v4139_v7  ;;  %v4171_v51 = vld [vmem:[#allocation7 + $0x28] sm:$0xff]  }
 0x2e2   : > { %v1233_v3 = vmul.f32 %v4124_v52, %v1220_v57  ;;  %2965 = vmatpush3.bf16.msra.mxu0 %v4141_v55  ;;  %v4175_v57 = vld [vmem:[#allocation7 + $0x70] sm:$0xff]  }
 0x2e3   : > { %v1234_v9 = vmul.f32 %v4127_v50, %v1221_v8  ;;  %2966 = vmatprep.subr.bf16.mxu0 %v4145_v63  ;;  %v4177_v8 = vld [vmem:[#allocation7 + $0x30] sm:$0xff]  }
 0x2e4   : > { %v1246_v22 = vadd.f32 %v4130_v62, %v1233_v3  ;;  %v4179_v3 = vld [vmem:[#allocation7 + $0x78] sm:$0xff]  }
 0x2e5   : > { %v1247_v32 = vadd.f32 %v4133_v10, %v1234_v9  ;;  %v4183_v9 = vld [vmem:[#allocation7 + $0x38] sm:$0xff]  }
 0x2e6   : > { %v1248_v28 = vmax.f32 %v1246_v22, 0.0  ;;  %2967 = vmatpush3.bf16.msra.mxu0 %v4147_v1  ;;  %v1250_v22 = vld [vmem:[%s4530_s7] ss:$4 sm:$0x3] }
 0x2e7   : > { %v1249_v33 = vmax.f32 %v1247_v32, 0.0  ;;  %2968 = vmatprep.subr.bf16.mxu0 %v4151_v60  ;;  %v4191_v32 = vrot.slane %v1250_v22, %v4102_v2 }
 0x2e8   : > { %v1255_v13 = vpack.c.bf16 %v1248_v28, %v1248_v28  ;;  %v4194_v28 = vrot.slane %v1250_v22, %v4107_v4 }
 0x2e9   : > { %v1256_v0 = vpack.c.bf16 %v1249_v33, %v1249_v33  ;;  %4648 = vst [vmem:[#allocation53_spill] sm:$0xff] %v4191_v32 }
 0x2ea   : > { %2969 = vmatpush3.bf16.msra.mxu0 %v4153_v59  ;;  %4649 = vst [vmem:[#allocation54_spill] sm:$0xff] %v4194_v28 }
 0x2eb   : > { %1492 = vmatprep.mubr.bf16.mxu1 %v1256_v0  ;;  %2970 = vmatprep.subr.bf16.mxu0 %v4157_v61 }
 0x2ec   : > { %1493 = vmatmul.mubr.bf16.vlgmr.msra.gmra.mrb[0].mxu1 %v1255_v13 }
 0x2ee   : > { %2971 = vmatpush3.bf16.msra.mxu0 %v4159_v58 }
 0x2ef   : > { %2972 = vmatprep.subr.bf16.mxu0 %v4163_v56 }
 0x2f2   : > { %2973 = vmatpush3.bf16.msra.mxu0 %v4165_v53 }
 0x2f3   : > { %2974 = vmatprep.subr.bf16.mxu0 %v4169_v54 }
 0x2f6   : > { %2975 = vmatpush3.bf16.msra.mxu0 %v4171_v51 }
 0x2f7   : > { %2976 = vmatprep.subr.bf16.mxu0 %v4175_v57 }
 0x2fa   : > { %2977 = vmatpush3.bf16.msra.mxu0 %v4177_v8 }
 0x2fb   : > { %2978 = vmatprep.subr.bf16.mxu0 %v4179_v3 }
 0x2fe   : > { %2979 = vmatpush3.bf16.msra.mxu0 %v4183_v9 }
 0x3bf   : > { %v1494_v33 = vpop.f32.mrb[0].mxu1 }
 0x3c0   : > { %v1495_v0 = vadd.f32 %v1494_v33, %v4191_v32  ;;  %v1496_v13 = vpop.f32.mrb[1].mxu1 }
 0x3c1   : > { %v1497_v62 = vadd.f32 %v1496_v13, %v4194_v28  ;;  %v1498_v52 = vpop.f32.mrb[2].mxu1 }
 0x3c2   : > { %v1501_v49 = vrot.slane %v1495_v0, 4  ;;  %v1499_v48 = vpop.f32.mrb[3].mxu1 }
 0x3c3   : > { %v1507_v47 = vrot.slane %v1497_v62, 4 }
 0x3c4   : > { %v1502_v46 = vadd.f32 %v1501_v49, %v1495_v0 }
 0x3c5   : > { %v1508_v10 = vadd.f32 %v1507_v47, %v1497_v62 }
 0x3c6   : > { %v1503_v45 = vrot.slane %v1502_v46, 2 }
 0x3c7   : > { %v1509_v50 = vrot.slane %v1508_v10, 2 }
 0x3c8   : > { %v1504_v44 = vadd.f32 %v1503_v45, %v1502_v46 }
 0x3c9   : > { %v1510_v43 = vadd.f32 %v1509_v50, %v1508_v10 }
 0x3ca   : > { %v1505_v42 = vrot.slane %v1504_v44, 1 }
 0x3cb   : > { %v1511_v41 = vrot.slane %v1510_v43, 1 }
 0x3cc   : > { %v1506_v22 = vadd.f32 %v1505_v42, %v1504_v44 }
 0x3cd   : > { %v1512_v40 = vadd.f32 %v1511_v41, %v1510_v43 }
 0x3ce   : > { %v1513_v39 = vmul.f32 0.125, %v1506_v22 }
 0x3cf   : > { %v1514_v38 = vmul.f32 0.125, %v1512_v40 }
 0x3d0   : > { %v1515_v33 = vsub.f32 %v1495_v0, %v1513_v39 }
 0x3d1   : > { %v1516_v32 = vsub.f32 %v1497_v62, %v1514_v38  ;;  %v2786_v38 = vld [vmem:[%s4530_s7 + $0x1] ss:$4 sm:$0x3] }
 0x3d2   : > { %v1517_v37 = vmul.f32 %v1515_v33, %v1515_v33 }
 0x3d3   : > { %v1518_v13 = vmul.f32 %v1516_v32, %v1516_v32 }
 0x3d4   : > { %v1519_v52 = vrot.slane %v1517_v37, 4 }
 0x3d5   : > { %v1525_v28 = vrot.slane %v1518_v13, 4 }
 0x3d6   : > { %v1520_v48 = vadd.f32 %v1519_v52, %v1517_v37  ;;  %v2787_v37 = vld [vmem:[%s4530_s7 + $0x2] ss:$4 sm:$0x3] }
 0x3d7   : > { %v1526_v36 = vadd.f32 %v1525_v28, %v1518_v13  ;;  %v4211_v62 = vrot.slane %v2787_v37, %v4102_v2  ;;  %v4214_v0 = vrot.slane %v2787_v37, %v4107_v4  ;;  %v4245_v37 = vld [vmem:[#allocation9 + $0x44] ss:$8 sps:$4 sm:$0xff]  }
 0x3d8   : > { %v1521_v49 = vrot.slane %v1520_v48, 2  ;;  %4659 = vst [vmem:[#allocation63_spill] sm:$0xff] %v4245_v37 }
 0x3d9   : > { %v1527_v47 = vrot.slane %v1526_v36, 2  ;;  %4650 = vst [vmem:[#allocation55_spill] sm:$0xff] %v4214_v0 }
 0x3da   : > { %v1522_v35 = vadd.f32 %v1521_v49, %v1520_v48 }
 0x3db   : > { %v1528_v34 = vadd.f32 %v1527_v47, %v1526_v36  ;;  %v4205_v36 = vrot.slane %v2786_v38, %v4102_v2 }
 0x3dc   : > { %v1523_v45 = vrot.slane %v1522_v35, 1 }
 0x3dd   : > { %v1529_v46 = vrot.slane %v1528_v34, 1 }
 0x3de   : > { %v1524_v50 = vadd.f32 %v1523_v45, %v1522_v35 }
 0x3df   : > { %v1530_v10 = vadd.f32 %v1529_v46, %v1528_v34  ;;  %v4208_v34 = vrot.slane %v2786_v38, %v4107_v4  ;;  %v4241_v38 = vld [vmem:[#allocation9 + $0x30] ss:$8 sps:$4 sm:$0xff]  }
 0x3e0   : > { %v1531_v42 = vmul.f32 0.125, %v1524_v50  ;;  %v4223_v50 = vld [vmem:[#allocation9] ss:$8 sps:$4 sm:$0xff]   ;;  %4658 = vst [vmem:[#allocation62_spill] sm:$0xff] %v4241_v38 }
 0x3e1   : > { %v1532_v41 = vmul.f32 0.125, %v1530_v10  ;;  %4652 = vst [vmem:[#allocation56_spill] sm:$0xff] %v4223_v50  ;;  %v4227_v10 = vld [vmem:[#allocation9 + $0x14] ss:$8 sps:$4 sm:$0xff]  }
 0x3e2   : > { %v1533_v43 = vadd.f32 1e-05, %v1531_v42  ;;  %4653 = vst [vmem:[#allocation57_spill] sm:$0xff] %v4227_v10  ;;  %v4229_v42 = vld [vmem:[#allocation9 + $0x10] ss:$8 sps:$4 sm:$0xff]  }
 0x3e3   : > { %v1534_v40 = vadd.f32 1e-05, %v1532_v41  ;;  %4654 = vst [vmem:[#allocation58_spill] sm:$0xff] %v4229_v42  ;;  %v4233_v41 = vld [vmem:[#allocation9 + $0x24] ss:$8 sps:$4 sm:$0xff]  }
 0x3e4   : > { %3288 = vrsqrt.f32 %v1533_v43  ;;  %4655 = vst [vmem:[#allocation59_spill] sm:$0xff] %v4233_v41  ;;  %v4235_v43 = vld [vmem:[#allocation9 + $0x20] ss:$8 sps:$4 sm:$0xff]  }
 0x3e5   : > { %3290 = vrsqrt.f32 %v1534_v40  ;;  %4656 = vst [vmem:[#allocation60_spill] sm:$0xff] %v4235_v43  ;;  %v4239_v40 = vld [vmem:[#allocation9 + $0x34] ss:$8 sps:$4 sm:$0xff]  }
 0x3e6   : > { %4657 = vst [vmem:[#allocation61_spill] sm:$0xff] %v4239_v40 }
 0x3ee   : > { %v3289_v39 = vpop.eup %3288 }
 0x3ef   : > { %v3291_v35 = vpop.eup %3290  ;;  %v1537_v44 = vmul.f32 %v3289_v39, %v1515_v33  ;;  %v4651_v33 = vmov 0   ;;  %v4247_v39 = vld [vmem:[#allocation9 + $0x40] ss:$8 sps:$4 sm:$0xff]  }
 0x3f0   : > { %v1538_v28 = vmul.f32 %v3291_v35, %v1516_v32  ;;  %v4221_v32 = vld [vmem:[#allocation9 + $0x4] ss:$8 sps:$4 sm:$0xff]   ;;  %4660 = vst [vmem:[#allocation64_spill] sm:$0xff] %v4247_v39  ;;  %v4251_v35 = vld [vmem:[#allocation9 + $0x54] ss:$8 sps:$4 sm:$0xff]  }
 0x3f1   : > { %v1550_v22 = vmul.f32 %v4205_v36, %v1537_v44  ;;  %1886 = vmatprep.subr.bf16.mxu0 %v4221_v32  ;;  %4661 = vst [vmem:[#allocation65_spill] sm:$0xff] %v4251_v35  ;;  %v4253_v44 = vld [vmem:[#allocation9 + $0x50] ss:$8 sps:$4 sm:$0xff]  }
 0x3f2   : > { %v1551_v13 = vmul.f32 %v4208_v34, %v1538_v28  ;;  %4662 = vst [vmem:[#allocation66_spill] sm:$0xff] %v4253_v44  ;;  %v4257_v28 = vld [vmem:[#allocation9 + $0x64] ss:$8 sps:$4 sm:$0xff]  }
 0x3f3   : > { %v1563_v52 = vadd.f32 %v4211_v62, %v1550_v22  ;;  %4663 = vst [vmem:[#allocation67_spill] sm:$0xff] %v4257_v28  ;;  %v4259_v22 = vld [vmem:[#allocation9 + $0x60] ss:$8 sps:$4 sm:$0xff]  }
 0x3f4   : > { %v1564_v48 = vadd.f32 %v4214_v0, %v1551_v13  ;;  %4664 = vst [vmem:[#allocation68_spill] sm:$0xff] %v4259_v22  ;;  %v4263_v13 = vld [vmem:[#allocation9 + $0x74] ss:$8 sps:$4 sm:$0xff]  }
 0x3f5   : > { %v1565_v49 = vmax.f32 %v1563_v52, 0.0  ;;  %4665 = vst [vmem:[#allocation69_spill] sm:$0xff] %v4263_v13  ;;  %v4265_v52 = vld [vmem:[#allocation9 + $0x70] ss:$8 sps:$4 sm:$0xff]  }
 0x3f6   : > { %v1566_v47 = vmax.f32 %v1564_v48, 0.0  ;;  %4666 = vst [vmem:[#allocation70_spill] sm:$0xff] %v4265_v52 }
 0x3f7   : > { %v1570_v46 = vpack.c.bf16 %v1565_v49, %v1565_v49  ;;  %v4273_v49 = vld [vmem:[%s4532_s9] ss:$0 sm:$0xff] }
 0x3f8   : > { %v1571_v45 = vpack.c.bf16 %v1566_v47, %v1566_v47 }
 0x3fa   : > { %1736 = vmatprep.mubr.bf16.mxu0 %v1571_v45 }
 0x3fb   : > { %1737 = vmatmul.mubr.bf16.vlgmr.msra.gmra.mrb[4].mxu0 %v1570_v46 }
 0x3fc   : > { %1918 = vmatprep.mubr.bf16.mxu0 %v4651_v33  ;;  %1887 = vmatpush1.bf16.msra.mxu0 %v4223_v50 }
 0x3fd   : > { %1888 = vmatprep.subr.bf16.mxu0 %v4227_v10 }
 0x400   : > { %1889 = vmatpush1.bf16.msra.mxu0 %v4229_v42 }
 0x401   : > { %1890 = vmatprep.subr.bf16.mxu0 %v4233_v41 }
 0x404   : > { %1891 = vmatpush1.bf16.msra.mxu0 %v4235_v43 }
 0x405   : > { %1892 = vmatprep.subr.bf16.mxu0 %v4239_v40 }
 0x408   : > { %1893 = vmatpush1.bf16.msra.mxu0 %v4241_v38 }
 0x409   : > { %1894 = vmatprep.subr.bf16.mxu0 %v4245_v37 }
 0x40c   : > { %1895 = vmatpush1.bf16.msra.mxu0 %v4247_v39 }
 0x40d   : > { %1896 = vmatprep.subr.bf16.mxu0 %v4251_v35 }
 0x410   : > { %1897 = vmatpush1.bf16.msra.mxu0 %v4253_v44 }
 0x411   : > { %1898 = vmatprep.subr.bf16.mxu0 %v4257_v28 }
 0x414   : > { %1899 = vmatpush1.bf16.msra.mxu0 %v4259_v22 }
 0x415   : > { %1900 = vmatprep.subr.bf16.mxu0 %v4263_v13 }
 0x418   : > { %1901 = vmatpush1.bf16.msra.mxu0 %v4265_v52 }
 0x419   : > { %2173 = vmatprep.subr.bf16.mxu0 %v3909_v11 }
 0x4ce   : > { %v2980_v48 = vpop.f32.mrb[4].mxu0 }
 0x4cf   : > { %v2981_v47 = vpop.f32.mrb[5].mxu0 }
 0x4d0   : > { %v2982_v45 = vadd.f32 %v2981_v47, %v2980_v48  ;;  %v2983_v46 = vpop.f32.mrb[6].mxu0 }
 0x4d1   : > { %v2984_v22 = vpop.f32.mrb[7].mxu0 }
 0x4d2   : > { %v1739_v28 = vadd.f32 %v2982_v45, %v4273_v49 }
 0x4d4   : > { %v1744_v44 = vrot.slane %v1739_v28, 4 }
 0x4d6   : > { %v1745_v35 = vadd.f32 %v1744_v44, %v1739_v28  ;;  %v4279_v44 = vld [vmem:[%s4532_s9 + $0x1] ss:$0 sm:$0xff] }
 0x4d8   : > { %v1746_v39 = vrot.slane %v1745_v35, 2 }
 0x4da   : > { %v1747_v13 = vadd.f32 %v1746_v39, %v1745_v35 }
 0x4dc   : > { %v1748_v37 = vrot.slane %v1747_v13, 1 }
 0x4de   : > { %v1749_v52 = vadd.f32 %v1748_v37, %v1747_v13 }
 0x4e0   : > { %v1750_v38 = vmul.f32 0.125, %v1749_v52 }
 0x4e2   : > { %v1751_v11 = vsub.f32 %v1739_v28, %v1750_v38  ;;  %v4284_v38 = vld [vmem:[%s4532_s9 + $0x2] ss:$0 sm:$0xff] }
 0x4e4   : > { %v1752_v40 = vmul.f32 %v1751_v11, %v1751_v11 }
 0x4e6   : > { %v1753_v43 = vrot.slane %v1752_v40, 4 }
 0x4e8   : > { %v1754_v41 = vadd.f32 %v1753_v43, %v1752_v40 }
 0x4ea   : > { %v1755_v42 = vrot.slane %v1754_v41, 2 }
 0x4ec   : > { %v1756_v10 = vadd.f32 %v1755_v42, %v1754_v41 }
 0x4ee   : > { %v1757_v50 = vrot.slane %v1756_v10, 1 }
 0x4f0   : > { %v1758_v0 = vadd.f32 %v1757_v50, %v1756_v10 }
 0x4f2   : > { %v1759_v48 = vmul.f32 0.125, %v1758_v0 }
 0x4f4   : > { %v1760_v47 = vadd.f32 1e-05, %v1759_v48 }
 0x4f6   : > { %3292 = vrsqrt.f32 %v1760_v47 }
 0x500   : > { %v3293_v22 = vpop.eup %3292 }
 0x501   : > { %v1762_v39 = vmul.f32 %v3293_v22, %v1751_v11 }
 0x503   : > { %v1767_v43 = vmul.f32 %v4279_v44, %v1762_v39 }
 0x505   : > { %v4288_v42 = vadd.f32 %v4284_v38, %v1767_v43 }
 0x507   : > { %v1778_v0 = vpack.c.bf16 %v4288_v42, %v4288_v42 }
 0x509   : > { %1919 = vmatmul.mubr.bf16.vlgmr.msra.gmra.mrb[8].mxu0 %v1778_v0 }
 0x50a   : > { %2174 = vmatpush1.bf16.msra.mxu0 %v3914_v12  ;;  %2205 = vmatprep.mubr.bf16.mxu0 %v4651_v33  ;;  %v2170_v12 = vld [vmem:[#allocation3] sm:$0xff] }
 0x50b   : > { %2175 = vmatprep.subr.bf16.mxu0 %v3921_v14  ;;  %v2171_v14 = vadd.f32 %v3994_v29, %v2170_v12  ;;  %v4356_v29 = vld [vmem:[#allocation12 + $0x68] sm:$0xff]  }
 0x50e   : > { %2176 = vmatpush1.bf16.msra.mxu0 %v3927_v15  ;;  %v2172_v15 = vpack.c.bf16 %v2171_v14, %v2171_v14 }
 0x50f   : > { %2177 = vmatprep.subr.bf16.mxu0 %v3933_v16  ;;  %v4326_v16 = vld [vmem:[#allocation12 + $0x40] sm:$0xff]  }
 0x510   : > { %2986 = vmatprep.subr.bf16.mxu1 %v4326_v16 }
 0x512   : > { %2178 = vmatpush1.bf16.msra.mxu0 %v3939_v17  ;;  %v4328_v17 = vld [vmem:[#allocation12] sm:$0xff]  }
 0x513   : > { %2179 = vmatprep.subr.bf16.mxu0 %v3945_v18  ;;  %2987 = vmatpush3.bf16.msra.mxu1 %v4328_v17  ;;  %v4332_v18 = vld [vmem:[#allocation12 + $0x48] sm:$0xff]  }
 0x514   : > { %2988 = vmatprep.subr.bf16.mxu1 %v4332_v18 }
 0x516   : > { %2180 = vmatpush1.bf16.msra.mxu0 %v3951_v19  ;;  %v4334_v19 = vld [vmem:[#allocation12 + $0x8] sm:$0xff]  }
 0x517   : > { %2181 = vmatprep.subr.bf16.mxu0 %v3956_v20  ;;  %2989 = vmatpush3.bf16.msra.mxu1 %v4334_v19  ;;  %v4338_v20 = vld [vmem:[#allocation12 + $0x50] sm:$0xff]  }
 0x518   : > { %2990 = vmatprep.subr.bf16.mxu1 %v4338_v20 }
 0x51a   : > { %2182 = vmatpush1.bf16.msra.mxu0 %v3964_v23  ;;  %v4340_v23 = vld [vmem:[#allocation12 + $0x10] sm:$0xff]  }
 0x51b   : > { %2183 = vmatprep.subr.bf16.mxu0 %v3969_v24  ;;  %2991 = vmatpush3.bf16.msra.mxu1 %v4340_v23  ;;  %v4344_v24 = vld [vmem:[#allocation12 + $0x58] sm:$0xff]  }
 0x51c   : > { %2992 = vmatprep.subr.bf16.mxu1 %v4344_v24 }
 0x51e   : > { %2184 = vmatpush1.bf16.msra.mxu0 %v3977_v25  ;;  %v4346_v25 = vld [vmem:[#allocation12 + $0x18] sm:$0xff]  }
 0x51f   : > { %2185 = vmatprep.subr.bf16.mxu0 %v3982_v26  ;;  %2993 = vmatpush3.bf16.msra.mxu1 %v4346_v25  ;;  %v4350_v26 = vld [vmem:[#allocation12 + $0x60] sm:$0xff]  }
 0x520   : > { %2994 = vmatprep.subr.bf16.mxu1 %v4350_v26 }
 0x522   : > { %2186 = vmatpush1.bf16.msra.mxu0 %v3989_v27  ;;  %v4352_v27 = vld [vmem:[#allocation12 + $0x20] sm:$0xff]  }
 0x523   : > { %2187 = vmatprep.subr.bf16.mxu0 %v3999_v30  ;;  %2995 = vmatpush3.bf16.msra.mxu1 %v4352_v27  ;;  %v4358_v30 = vld [vmem:[#allocation12 + $0x28] sm:$0xff]  }
 0x524   : > { %2996 = vmatprep.subr.bf16.mxu1 %v4356_v29 }
 0x526   : > { %2188 = vmatpush1.bf16.msra.mxu0 %v4006_v31  ;;  %v4362_v31 = vld [vmem:[#allocation12 + $0x70] sm:$0xff]  }
 0x527   : > { %3008 = vmatprep.subr.bf16.mxu0 %v4139_v7  ;;  %2997 = vmatpush3.bf16.msra.mxu1 %v4358_v30  ;;  %v4364_v7 = vld [vmem:[#allocation12 + $0x30] sm:$0xff]  }
 0x528   : > { %2998 = vmatprep.subr.bf16.mxu1 %v4362_v31 }
 0x529   : > { %2206 = vmatmul.mubr.bf16.vlgmr.msra.gmra.mrb[12].mxu0 %v2172_v15 }
 0x52a   : > { %3009 = vmatpush3.bf16.msra.mxu0 %v4141_v55  ;;  %v4368_v55 = vld [vmem:[#allocation12 + $0x78] sm:$0xff]  }
 0x52b   : > { %3010 = vmatprep.subr.bf16.mxu0 %v4145_v63  ;;  %2999 = vmatpush3.bf16.msra.mxu1 %v4364_v7  ;;  %v4370_v63 = vld [vmem:[#allocation12 + $0x38] sm:$0xff]  }
 0x52c   : > { %3000 = vmatprep.subr.bf16.mxu1 %v4368_v55 }
 0x52e   : > { %3011 = vmatpush3.bf16.msra.mxu0 %v4147_v1  ;;  %v1773_v1 = vld [vmem:[#allocation10] ss:$4 sm:$0x3] }
 0x52f   : > { %3012 = vmatprep.subr.bf16.mxu0 %v4151_v60  ;;  %3001 = vmatpush3.bf16.msra.mxu1 %v4370_v63  ;;  %v4376_v60 = vrot.slane %v1773_v1, %v4102_v2 }
 0x530   : > { %2260 = vmatprep.subr.bf16.mxu1 %v3959_v21 }
 0x532   : > { %3013 = vmatpush3.bf16.msra.mxu0 %v4153_v59  ;;  %v4379_v59 = vrot.slane %v1773_v1, %v4107_v4 }
 0x533   : > { %3014 = vmatprep.subr.bf16.mxu0 %v4157_v61 }
 0x536   : > { %3015 = vmatpush3.bf16.msra.mxu0 %v4159_v58 }
 0x537   : > { %3016 = vmatprep.subr.bf16.mxu0 %v4163_v56 }
 0x53a   : > { %3017 = vmatpush3.bf16.msra.mxu0 %v4165_v53 }
 0x53b   : > { %3018 = vmatprep.subr.bf16.mxu0 %v4169_v54 }
 0x53e   : > { %3019 = vmatpush3.bf16.msra.mxu0 %v4171_v51 }
 0x53f   : > { %3020 = vmatprep.subr.bf16.mxu0 %v4175_v57 }
 0x542   : > { %3021 = vmatpush3.bf16.msra.mxu0 %v4177_v8 }
 0x543   : > { %3022 = vmatprep.subr.bf16.mxu0 %v4179_v3 }
 0x546   : > { %3023 = vmatpush3.bf16.msra.mxu0 %v4183_v9 }
 0x547   : > { %2409 = vmatprep.subr.bf16.mxu0 %v4221_v32 }
 0x5dc   : > { %v1920_v61 = vpop.f32.mrb[8].mxu0 }
 0x5dd   : > { %v1921_v58 = vadd.f32 %v1920_v61, %v4376_v60  ;;  %v1922_v56 = vpop.f32.mrb[9].mxu0 }
 0x5de   : > { %v1923_v53 = vadd.f32 %v1922_v56, %v4379_v59  ;;  %v1924_v54 = vpop.f32.mrb[10].mxu0 }
 0x5df   : > { %v1927_v51 = vrot.slane %v1921_v58, 4  ;;  %v1925_v57 = vpop.f32.mrb[11].mxu0 }
 0x5e0   : > { %v1933_v8 = vrot.slane %v1923_v53, 4 }
 0x5e1   : > { %v1928_v3 = vadd.f32 %v1927_v51, %v1921_v58 }
 0x5e2   : > { %v1934_v9 = vadd.f32 %v1933_v8, %v1923_v53 }
 0x5e3   : > { %v1929_v21 = vrot.slane %v1928_v3, 2 }
 0x5e4   : > { %v1935_v32 = vrot.slane %v1934_v9, 2 }
 0x5e5   : > { %v1930_v50 = vadd.f32 %v1929_v21, %v1928_v3 }
 0x5e6   : > { %v1936_v10 = vadd.f32 %v1935_v32, %v1934_v9 }
 0x5e7   : > { %v1931_v41 = vrot.slane %v1930_v50, 1 }
 0x5e8   : > { %v1937_v40 = vrot.slane %v1936_v10, 1 }
 0x5e9   : > { %v1932_v37 = vadd.f32 %v1931_v41, %v1930_v50 }
 0x5ea   : > { %v1938_v35 = vadd.f32 %v1937_v40, %v1936_v10 }
 0x5eb   : > { %v1939_v28 = vmul.f32 0.125, %v1932_v37 }
 0x5ec   : > { %v1940_v13 = vmul.f32 0.125, %v1938_v35 }
 0x5ed   : > { %v1941_v52 = vsub.f32 %v1921_v58, %v1939_v28 }
 0x5ee   : > { %v1942_v45 = vsub.f32 %v1923_v53, %v1940_v13 }
 0x5ef   : > { %v1943_v46 = vmul.f32 %v1941_v52, %v1941_v52 }
 0x5f0   : > { %v1944_v11 = vmul.f32 %v1942_v45, %v1942_v45 }
 0x5f1   : > { %v1945_v48 = vrot.slane %v1943_v46, 4 }
 0x5f2   : > { %v1951_v47 = vrot.slane %v1944_v11, 4 }
 0x5f3   : > { %v1946_v22 = vadd.f32 %v1945_v48, %v1943_v46  ;;  %v1775_v46 = vld [vmem:[#allocation10 + $0x1] ss:$4 sm:$0x3] }
 0x5f4   : > { %v1952_v39 = vadd.f32 %v1951_v47, %v1944_v11  ;;  %v1777_v47 = vld [vmem:[#allocation10 + $0x2] ss:$4 sm:$0x3] }
 0x5f5   : > { %v1947_v43 = vrot.slane %v1946_v22, 2 }
 0x5f6   : > { %v1953_v0 = vrot.slane %v1952_v39, 2 }
 0x5f7   : > { %v1948_v12 = vadd.f32 %v1947_v43, %v1946_v22  ;;  %v4389_v43 = vrot.slane %v1775_v46, %v4107_v4 }
 0x5f8   : > { %v1954_v14 = vadd.f32 %v1953_v0, %v1952_v39 }
 0x5f9   : > { %v1949_v15 = vrot.slane %v1948_v12, 1 }
 0x5fa   : > { %v1955_v1 = vrot.slane %v1954_v14, 1 }
 0x5fb   : > { %v1950_v61 = vadd.f32 %v1949_v15, %v1948_v12  ;;  %v4392_v15 = vrot.slane %v1777_v47, %v4102_v2 }
 0x5fc   : > { %v1956_v56 = vadd.f32 %v1955_v1, %v1954_v14  ;;  %v2207_v54 = vpop.f32.mrb[12].mxu0 }
 0x5fd   : > { %v1957_v51 = vmul.f32 0.125, %v1950_v61  ;;  %v2208_v57 = vadd.f32 %v2207_v54, %v4110_v5  ;;  %v2209_v58 = vpop.f32.mrb[13].mxu0 }
 0x5fe   : > { %v1958_v53 = vmul.f32 0.125, %v1956_v56  ;;  %v2210_v8 = vadd.f32 %v2209_v58, %v4113_v6  ;;  %v2211_v3 = vpop.f32.mrb[14].mxu0  ;;  %v4386_v6 = vrot.slane %v1775_v46, %v4102_v2  ;;  %v4395_v56 = vrot.slane %v1777_v47, %v4107_v4  ;;  %v4668_v46 = vld [vmem:[#allocation20_spill] sm:$0xff] }
 0x5ff   : > { %v1959_v9 = vadd.f32 1e-05, %v1957_v51  ;;  %v2214_v21 = vrot.slane %v2208_v57, 4  ;;  %v2212_v32 = vpop.f32.mrb[15].mxu0 }
 0x600   : > { %v1960_v50 = vadd.f32 1e-05, %v1958_v53  ;;  %v2220_v10 = vrot.slane %v2210_v8, 4 }
 0x601   : > { %3294 = vrsqrt.f32 %v1959_v9  ;;  %v2215_v41 = vadd.f32 %v2214_v21, %v2208_v57 }
 0x602   : > { %3296 = vrsqrt.f32 %v1960_v50  ;;  %v2221_v40 = vadd.f32 %v2220_v10, %v2210_v8 }
 0x603   : > { %v2216_v37 = vrot.slane %v2215_v41, 2 }
 0x604   : > { %v2222_v35 = vrot.slane %v2221_v40, 2 }
 0x605   : > { %v2217_v28 = vadd.f32 %v2216_v37, %v2215_v41  ;;  %v3320_v37 = vld [vmem:[#allocation4] ss:$8 sps:$4 sm:$0xff]  }
 0x606   : > { %v2223_v13 = vadd.f32 %v2222_v35, %v2221_v40 }
 0x607   : > { %v2218_v5 = vrot.slane %v2217_v28, 1 }
 0x608   : > { %v2224_v11 = vrot.slane %v2223_v13, 1 }
 0x609   : > { %v2219_v48 = vadd.f32 %v2218_v5, %v2217_v28  ;;  %v4667_v28 = vld [vmem:[#allocation19_spill] sm:$0xff] }
 0x60a   : > { %v2225_v22 = vadd.f32 %v2224_v11, %v2223_v13  ;;  %v4669_v11 = vld [vmem:[#allocation21_spill] sm:$0xff] }
 0x60b   : > { %v3295_v39 = vpop.eup %3294  ;;  %v2226_v61 = vmul.f32 0.125, %v2219_v48 }
 0x60c   : > { %v3297_v0 = vpop.eup %3296  ;;  %v1963_v12 = vmul.f32 %v3295_v39, %v1941_v52  ;;  %v2227_v14 = vmul.f32 0.125, %v2225_v22  ;;  %v4670_v22 = vld [vmem:[#allocation22_spill] sm:$0xff]  ;;  %v4671_v39 = vld [vmem:[#allocation23_spill] sm:$0xff] }
 0x60d   : > { %v1964_v1 = vmul.f32 %v3297_v0, %v1942_v45  ;;  %v2228_v9 = vsub.f32 %v2208_v57, %v2226_v61  ;;  %v4674_v61 = vld [vmem:[#allocation26_spill] sm:$0xff] }
 0x60e   : > { %v1976_v54 = vmul.f32 %v4386_v6, %v1963_v12  ;;  %v2229_v51 = vsub.f32 %v2210_v8, %v2227_v14  ;;  %v4672_v12 = vld [vmem:[#allocation24_spill] sm:$0xff]  ;;  %v4673_v14 = vld [vmem:[#allocation25_spill] sm:$0xff] }
 0x60f   : > { %v1977_v58 = vmul.f32 %v4389_v43, %v1964_v1  ;;  %v2230_v45 = vmul.f32 %v2228_v9, %v2228_v9 }
 0x610   : > { %v2231_v53 = vmul.f32 %v2229_v51, %v2229_v51  ;;  %v1989_v3 = vadd.f32 %v4392_v15, %v1976_v54  ;;  %v4675_v54 = vld [vmem:[#allocation27_spill] sm:$0xff] }
 0x611   : > { %v1990_v52 = vadd.f32 %v4395_v56, %v1977_v58  ;;  %v2232_v8 = vrot.slane %v2230_v45, 4 }
 0x612   : > { %v2238_v21 = vrot.slane %v2231_v53, 4  ;;  %v1991_v32 = vmax.f32 %v1989_v3, 0.0 }
 0x613   : > { %v1992_v2 = vmax.f32 %v1990_v52, 0.0  ;;  %v2233_v13 = vadd.f32 %v2232_v8, %v2230_v45  ;;  %v4676_v52 = vld [vmem:[#allocation28_spill] sm:$0xff]  ;;  %v4679_v45 = vld [vmem:[#allocation30_spill] sm:$0xff] }
 0x614   : > { %v2239_v50 = vadd.f32 %v2238_v21, %v2231_v53  ;;  %v1994_v4 = vpack.c.bf16 %v1991_v32, %v1991_v32  ;;  %v4677_v21 = vld [vmem:[#allocation29_spill] sm:$0xff]  ;;  %v4678_v32 = vld [vmem:[#allocation50_spill] sm:$0xff] }
 0x615   : > { %v1995_v10 = vpack.c.bf16 %v1992_v2, %v1992_v2  ;;  %v2234_v47 = vrot.slane %v2233_v13, 2 }
 0x616   : > { %v2240_v41 = vrot.slane %v2239_v50, 2 }
 0x617   : > { %2162 = vmatprep.mubr.bf16.mxu1 %v1995_v10  ;;  %v2235_v0 = vadd.f32 %v2234_v47, %v2233_v13  ;;  %v4680_v10 = vld [vmem:[#allocation52_spill] sm:$0xff] }
 0x618   : > { %v2241_v40 = vadd.f32 %v2240_v41, %v2239_v50  ;;  %2163 = vmatmul.mubr.bf16.vlgmr.msra.gmra.mrb[4].mxu1 %v1994_v4  ;;  %v4681_v4 = vld [vmem:[#allocation31_spill] sm:$0xff]  ;;  %v4686_v13 = vld [vmem:[#allocation36_spill] sm:$0xff] }
 0x619   : > { %2261 = vmatpush1.bf16.msra.mxu1 %v3320_v37  ;;  %v2236_v1 = vrot.slane %v2235_v0, 1  ;;  %v4682_v37 = vld [vmem:[#allocation32_spill] sm:$0xff] }
 0x61a   : > { %v2242_v35 = vrot.slane %v2241_v40, 1  ;;  %2262 = vmatprep.subr.bf16.mxu1 %v4667_v28  ;;  %v4683_v28 = vld [vmem:[#allocation33_spill] sm:$0xff]  ;;  %v4690_v47 = vld [vmem:[#allocation40_spill] sm:$0xff] }
 0x61b   : > { %v2237_v53 = vadd.f32 %v2236_v1, %v2235_v0  ;;  %v4692_v0 = vld [vmem:[#allocation42_spill] sm:$0xff]  ;;  %v4694_v1 = vld [vmem:[#allocation43_spill] sm:$0xff] }
 0x61c   : > { %v2243_v57 = vadd.f32 %v2242_v35, %v2241_v40 }
 0x61d   : > { %2263 = vmatpush1.bf16.msra.mxu1 %v4668_v46  ;;  %v2244_v50 = vmul.f32 0.125, %v2237_v53  ;;  %v4687_v46 = vld [vmem:[#allocation37_spill] sm:$0xff] }
 0x61e   : > { %v2245_v5 = vmul.f32 0.125, %v2243_v57  ;;  %2264 = vmatprep.subr.bf16.mxu1 %v4669_v11  ;;  %v4685_v57 = vld [vmem:[#allocation35_spill] sm:$0xff] }
 0x61f   : > { %v2246_v8 = vadd.f32 1e-05, %v2244_v50  ;;  %v4689_v11 = vld [vmem:[#allocation39_spill] sm:$0xff] }
 0x620   : > { %v2247_v48 = vadd.f32 1e-05, %v2245_v5  ;;  %v4688_v5 = vld [vmem:[#allocation38_spill] sm:$0xff] }
 0x621   : > { %2265 = vmatpush1.bf16.msra.mxu1 %v4670_v22 }
 0x622   : > { %3298 = vrsqrt.f32 %v2247_v48  ;;  %2266 = vmatprep.subr.bf16.mxu1 %v4671_v39  ;;  %v4691_v39 = vld [vmem:[#allocation41_spill] sm:$0xff] }
 0x623   : > { %3300 = vrsqrt.f32 %v2246_v8 }
 0x625   : > { %2267 = vmatpush1.bf16.msra.mxu1 %v4672_v12  ;;  %v4693_v12 = vld [vmem:[#allocation49_spill] sm:$0xff] }
 0x626   : > { %2268 = vmatprep.subr.bf16.mxu1 %v4673_v14 }
 0x629   : > { %2269 = vmatpush1.bf16.msra.mxu1 %v4674_v61  ;;  %v4695_v61 = vld [vmem:[#allocation44_spill] sm:$0xff] }
 0x62a   : > { %2270 = vmatprep.subr.bf16.mxu1 %v4675_v54  ;;  %v4696_v54 = vld [vmem:[#allocation45_spill] sm:$0xff] }
 0x62c   : > { %v3299_v58 = vpop.eup %3298 }
 0x62d   : > { %v2251_v3 = vmul.f32 %v3299_v58, %v2229_v51  ;;  %2271 = vmatpush1.bf16.msra.mxu1 %v4676_v52  ;;  %v4684_v51 = vld [vmem:[#allocation34_spill] sm:$0xff]  ;;  %v3301_v48 = vpop.eup %3300  ;;  %v4697_v58 = vld [vmem:[#allocation51_spill] sm:$0xff] }
 0x62e   : > { %2272 = vmatprep.subr.bf16.mxu1 %v4677_v21  ;;  %v2250_v22 = vmul.f32 %v3301_v48, %v2228_v9  ;;  %v4699_v52 = vld [vmem:[#allocation47_spill] sm:$0xff]  ;;  %v4700_v9 = vld [vmem:[#allocation48_spill] sm:$0xff] }
 0x62f   : > { %v2253_v2 = vmul.f32 %v2251_v3, %v4678_v32  ;;  %v4698_v3 = vld [vmem:[#allocation46_spill] sm:$0xff] }
 0x630   : > { %v2252_v14 = vmul.f32 %v2250_v22, %v4693_v12 }
 0x631   : > { %2273 = vmatpush1.bf16.msra.mxu1 %v4679_v45  ;;  %v2255_v41 = vadd.f32 %v2253_v2, %v4680_v10 }
 0x632   : > { %2274 = vmatprep.subr.bf16.mxu1 %v4681_v4  ;;  %v2254_v53 = vadd.f32 %v2252_v14, %v4697_v58 }
 0x633   : > { %v2257_v40 = vmax.f32 %v2255_v41, 0.0 }
 0x634   : > { %v2256_v21 = vmax.f32 %v2254_v53, 0.0 }
 0x635   : > { %2275 = vmatpush1.bf16.msra.mxu1 %v4682_v37  ;;  %v2259_v35 = vpack.c.bf16 %v2257_v40, %v2257_v40 }
 0x636   : > { %2276 = vmatprep.subr.bf16.mxu1 %v4683_v28  ;;  %v2258_v32 = vpack.c.bf16 %v2256_v21, %v2256_v21 }
 0x637   : > { %2292 = vmatprep.mubr.bf16.mxu1 %v2259_v35 }
 0x639   : > { %2277 = vmatpush1.bf16.msra.mxu1 %v4684_v51 }
 0x63a   : > { %2278 = vmatprep.subr.bf16.mxu1 %v4685_v57 }
 0x63d   : > { %2279 = vmatpush1.bf16.msra.mxu1 %v4686_v13 }
 0x63e   : > { %2280 = vmatprep.subr.bf16.mxu1 %v4687_v46 }
 0x641   : > { %2281 = vmatpush1.bf16.msra.mxu1 %v4688_v5 }
 0x642   : > { %2282 = vmatprep.subr.bf16.mxu1 %v4689_v11 }
 0x645   : > { %2283 = vmatpush1.bf16.msra.mxu1 %v4690_v47 }
 0x646   : > { %2284 = vmatprep.subr.bf16.mxu1 %v4691_v39 }
 0x649   : > { %2285 = vmatpush1.bf16.msra.mxu1 %v4692_v0 }
 0x64a   : > { %2286 = vmatprep.subr.bf16.mxu1 %v4694_v1 }
 0x64d   : > { %2287 = vmatpush1.bf16.msra.mxu1 %v4695_v61 }
 0x64e   : > { %2288 = vmatprep.subr.bf16.mxu1 %v4696_v54 }
 0x651   : > { %2289 = vmatpush1.bf16.msra.mxu1 %v4698_v3 }
 0x652   : > { %2290 = vmatprep.subr.bf16.mxu1 %v4699_v52 }
 0x655   : > { %2291 = vmatpush1.bf16.msra.mxu1 %v4700_v9 }
 0x656   : > { %3030 = vmatprep.subr.bf16.mxu1 %v4326_v16 }
 0x658   : > { %2293 = vmatmul.mubr.bf16.vlgmr.msra.gmra.mrb[8].mxu1 %v2258_v32 }
 0x659   : > { %3031 = vmatpush3.bf16.msra.mxu1 %v4328_v17 }
 0x65a   : > { %3032 = vmatprep.subr.bf16.mxu1 %v4332_v18  ;;  %v4454_v18 = vld [vmem:[%s4701_s23] ss:$0 sm:$0xff] }
 0x65d   : > { %3033 = vmatpush3.bf16.msra.mxu1 %v4334_v19 }
 0x65e   : > { %3034 = vmatprep.subr.bf16.mxu1 %v4338_v20 }
 0x661   : > { %3035 = vmatpush3.bf16.msra.mxu1 %v4340_v23 }
 0x662   : > { %3036 = vmatprep.subr.bf16.mxu1 %v4344_v24 }
 0x665   : > { %3037 = vmatpush3.bf16.msra.mxu1 %v4346_v25 }
 0x666   : > { %3038 = vmatprep.subr.bf16.mxu1 %v4350_v26 }
 0x669   : > { %3039 = vmatpush3.bf16.msra.mxu1 %v4352_v27  ;;  %v4702_v27 = vld [vmem:[#allocation53_spill] sm:$0xff] }
 0x66a   : > { %3040 = vmatprep.subr.bf16.mxu1 %v4356_v29 }
 0x66d   : > { %3041 = vmatpush3.bf16.msra.mxu1 %v4358_v30 }
 0x66e   : > { %3042 = vmatprep.subr.bf16.mxu1 %v4362_v31  ;;  %v4703_v31 = vld [vmem:[#allocation54_spill] sm:$0xff] }
 0x671   : > { %3043 = vmatpush3.bf16.msra.mxu1 %v4364_v7 }
 0x672   : > { %3044 = vmatprep.subr.bf16.mxu1 %v4368_v55 }
 0x675   : > { %3045 = vmatpush3.bf16.msra.mxu1 %v4370_v63 }
 0x6eb   : > { %v3002_v16 = vpop.f32.mrb[4].mxu1 }
 0x6ec   : > { %v3003_v17 = vpop.f32.mrb[5].mxu1 }
 0x6ed   : > { %v3004_v19 = vadd.f32 %v3003_v17, %v3002_v16  ;;  %v3005_v20 = vpop.f32.mrb[6].mxu1 }
 0x6ee   : > { %v3006_v23 = vpop.f32.mrb[7].mxu1 }
 0x6ef   : > { %v4457_v24 = vadd.f32 %v3004_v19, %v4454_v18 }
 0x6f1   : > { %v2539_v25 = vmul.f32 %v4457_v24, %v4457_v24 }
 0x6f3   : > { %2540 = vadd.xlane.f32.xlu0 %v2539_v25 }
 0x72b   : > { %v2294_v26 = vpop.f32.mrb[8].mxu1 }
 0x72c   : > { %v2295_v29 = vadd.f32 %v2294_v26, %v4702_v27  ;;  %v2296_v30 = vpop.f32.mrb[9].mxu1  ;;  %v4704_v27 = vld [vmem:[#allocation55_spill] sm:$0xff] }
 0x72d   : > { %v2297_v7 = vadd.f32 %v2296_v30, %v4703_v31  ;;  %v2298_v55 = vpop.f32.mrb[10].mxu1 }
 0x72e   : > { %v2301_v63 = vrot.slane %v2295_v29, 4  ;;  %v2299_v2 = vpop.f32.mrb[11].mxu1 }
 0x72f   : > { %v2307_v50 = vrot.slane %v2297_v7, 4  ;;  %v4706_v2 = vld [vmem:[#allocation57_spill] sm:$0xff] }
 0x730   : > { %v2302_v45 = vadd.f32 %v2301_v63, %v2295_v29  ;;  %v4705_v63 = vld [vmem:[#allocation56_spill] sm:$0xff] }
 0x731   : > { %v2308_v10 = vadd.f32 %v2307_v50, %v2297_v7  ;;  %v4707_v50 = vld [vmem:[#allocation58_spill] sm:$0xff] }
 0x732   : > { %v2303_v41 = vrot.slane %v2302_v45, 2 }
 0x733   : > { %v2309_v4 = vrot.slane %v2308_v10, 2 }
 0x734   : > { %v2304_v40 = vadd.f32 %v2303_v41, %v2302_v45  ;;  %v4711_v45 = vld [vmem:[#allocation62_spill] sm:$0xff]  ;;  %v4713_v41 = vld [vmem:[#allocation64_spill] sm:$0xff] }
 0x735   : > { %v2310_v8 = vadd.f32 %v2309_v4, %v2308_v10  ;;  %v4712_v10 = vld [vmem:[#allocation63_spill] sm:$0xff]  ;;  %v4714_v4 = vld [vmem:[#allocation65_spill] sm:$0xff] }
 0x736   : > { %v2305_v37 = vrot.slane %v2304_v40, 1 }
 0x737   : > { %v2311_v35 = vrot.slane %v2310_v8, 1 }
 0x738   : > { %v2306_v28 = vadd.f32 %v2305_v37, %v2304_v40  ;;  %v4715_v40 = vld [vmem:[#allocation66_spill] sm:$0xff]  ;;  %v4718_v37 = vld [vmem:[#allocation69_spill] sm:$0xff] }
 0x739   : > { %v2312_v51 = vadd.f32 %v2311_v35, %v2310_v8  ;;  %v4717_v8 = vld [vmem:[#allocation68_spill] sm:$0xff]  ;;  %v4719_v35 = vld [vmem:[#allocation70_spill] sm:$0xff] }
 0x73a   : > { %v2313_v57 = vmul.f32 0.125, %v2306_v28 }
 0x73b   : > { %v2314_v13 = vmul.f32 0.125, %v2312_v51 }
 0x73c   : > { %v2315_v46 = vsub.f32 %v2295_v29, %v2313_v57 }
 0x73d   : > { %v2316_v5 = vsub.f32 %v2297_v7, %v2314_v13 }
 0x73e   : > { %v2317_v11 = vmul.f32 %v2315_v46, %v2315_v46 }
 0x73f   : > { %v2318_v48 = vmul.f32 %v2316_v5, %v2316_v5 }
 0x740   : > { %v2319_v47 = vrot.slane %v2317_v11, 4 }
 0x741   : > { %v2325_v22 = vrot.slane %v2318_v48, 4 }
 0x742   : > { %v2320_v39 = vadd.f32 %v2319_v47, %v2317_v11 }
 0x743   : > { %v2326_v0 = vadd.f32 %v2325_v22, %v2318_v48 }
 0x744   : > { %v2321_v12 = vrot.slane %v2320_v39, 2 }
 0x745   : > { %v2327_v14 = vrot.slane %v2326_v0, 2 }
 0x746   : > { %v2322_v1 = vadd.f32 %v2321_v12, %v2320_v39 }
 0x747   : > { %v2328_v61 = vadd.f32 %v2327_v14, %v2326_v0 }
 0x748   : > { %v2323_v54 = vrot.slane %v2322_v1, 1 }
 0x749   : > { %v2329_v58 = vrot.slane %v2328_v61, 1 }
 0x74a   : > { %v2324_v53 = vadd.f32 %v2323_v54, %v2322_v1 }
 0x74b   : > { %v2330_v3 = vadd.f32 %v2329_v58, %v2328_v61 }
 0x74c   : > { %v2331_v52 = vmul.f32 0.125, %v2324_v53 }
 0x74d   : > { %v2332_v21 = vmul.f32 0.125, %v2330_v3 }
 0x74e   : > { %v2333_v9 = vadd.f32 1e-05, %v2331_v52 }
 0x74f   : > { %v2334_v32 = vadd.f32 1e-05, %v2332_v21 }
 0x750   : > { %3302 = vrsqrt.f32 %v2333_v9 }
 0x751   : > { %3304 = vrsqrt.f32 %v2334_v32 }
 0x75a   : > { %v3303_v16 = vpop.eup %3302 }
 0x75b   : > { %v3305_v17 = vpop.eup %3304  ;;  %v2337_v19 = vmul.f32 %v3303_v16, %v2315_v46 }
 0x75c   : > { %v2338_v20 = vmul.f32 %v3305_v17, %v2316_v5 }
 0x75d   : > { %v2339_v23 = vmul.f32 %v2337_v19, %v4205_v36  ;;  %v4708_v36 = vld [vmem:[#allocation59_spill] sm:$0xff] }
 0x75e   : > { %v2340_v25 = vmul.f32 %v2338_v20, %v4208_v34  ;;  %v4709_v34 = vld [vmem:[#allocation60_spill] sm:$0xff] }
 0x75f   : > { %v2341_v26 = vadd.f32 %v2339_v23, %v4211_v62  ;;  %v4710_v62 = vld [vmem:[#allocation61_spill] sm:$0xff] }
 0x760   : > { %v2342_v29 = vadd.f32 %v2340_v25, %v4704_v27 }
 0x761   : > { %v2343_v30 = vmax.f32 %v2341_v26, 0.0 }
 0x762   : > { %v2344_v31 = vmax.f32 %v2342_v29, 0.0 }
 0x763   : > { %v2345_v55 = vpack.c.bf16 %v2343_v30, %v2343_v30 }
 0x764   : > { %v2346_v7 = vpack.c.bf16 %v2344_v31, %v2344_v31 }
 0x766   : > { %2379 = vmatprep.mubr.bf16.mxu0 %v2346_v7 }
 0x767   : > { %2380 = vmatmul.mubr.bf16.vlgmr.msra.gmra.mrb[16].mxu0 %v2345_v55 }
 0x768   : > { %2410 = vmatpush1.bf16.msra.mxu0 %v4705_v63  ;;  %2441 = vmatprep.mubr.bf16.mxu0 %v4651_v33  ;;  %v4716_v33 = vld [vmem:[#allocation67_spill] sm:$0xff] }
 0x769   : > { %2411 = vmatprep.subr.bf16.mxu0 %v4706_v2 }
 0x76c   : > { %2412 = vmatpush1.bf16.msra.mxu0 %v4707_v50 }
 0x76d   : > { %2413 = vmatprep.subr.bf16.mxu0 %v4708_v36 }
 0x770   : > { %2414 = vmatpush1.bf16.msra.mxu0 %v4709_v34 }
 0x771   : > { %2415 = vmatprep.subr.bf16.mxu0 %v4710_v62 }
 0x774   : > { %2416 = vmatpush1.bf16.msra.mxu0 %v4711_v45 }
 0x775   : > { %2417 = vmatprep.subr.bf16.mxu0 %v4712_v10 }
 0x778   : > { %2418 = vmatpush1.bf16.msra.mxu0 %v4713_v41 }
 0x779   : > { %2419 = vmatprep.subr.bf16.mxu0 %v4714_v4 }
 0x77c   : > { %2420 = vmatpush1.bf16.msra.mxu0 %v4715_v40 }
 0x77d   : > { %2421 = vmatprep.subr.bf16.mxu0 %v4716_v33 }
 0x780   : > { %2422 = vmatpush1.bf16.msra.mxu0 %v4717_v8 }
 0x781   : > { %2423 = vmatprep.subr.bf16.mxu0 %v4718_v37 }
 0x784   : > { %2424 = vmatpush1.bf16.msra.mxu0 %v4719_v35 }
 0x83a   : > { %v3024_v28 = vpop.f32.mrb[16].mxu0 }
 0x83b   : > { %v3025_v51 = vpop.f32.mrb[17].mxu0 }
 0x83c   : > { %v3026_v57 = vadd.f32 %v3025_v51, %v3024_v28  ;;  %v3027_v13 = vpop.f32.mrb[18].mxu0 }
 0x83d   : > { %v3028_v46 = vpop.f32.mrb[19].mxu0 }
 0x83e   : > { %v2382_v5 = vadd.f32 %v3026_v57, %v4273_v49 }
 0x840   : > { %v2387_v11 = vrot.slane %v2382_v5, 4 }
 0x842   : > { %v2388_v48 = vadd.f32 %v2387_v11, %v2382_v5 }
 0x844   : > { %v2389_v47 = vrot.slane %v2388_v48, 2 }
 0x846   : > { %v2390_v22 = vadd.f32 %v2389_v47, %v2388_v48 }
 0x848   : > { %v2391_v39 = vrot.slane %v2390_v22, 1 }
 0x84a   : > { %v2392_v0 = vadd.f32 %v2391_v39, %v2390_v22 }
 0x84c   : > { %v2393_v12 = vmul.f32 0.125, %v2392_v0 }
 0x84e   : > { %v2394_v14 = vsub.f32 %v2382_v5, %v2393_v12 }
 0x850   : > { %v2395_v1 = vmul.f32 %v2394_v14, %v2394_v14 }
 0x852   : > { %v2396_v61 = vrot.slane %v2395_v1, 4 }
 0x854   : > { %v2397_v54 = vadd.f32 %v2396_v61, %v2395_v1 }
 0x856   : > { %v2398_v58 = vrot.slane %v2397_v54, 2 }
 0x858   : > { %v2399_v53 = vadd.f32 %v2398_v58, %v2397_v54 }
 0x85a   : > { %v2400_v3 = vrot.slane %v2399_v53, 1 }
 0x85c   : > { %v2401_v52 = vadd.f32 %v2400_v3, %v2399_v53 }
 0x85e   : > { %v2402_v21 = vmul.f32 0.125, %v2401_v52 }
 0x860   : > { %v2403_v9 = vadd.f32 1e-05, %v2402_v21 }
 0x862   : > { %3306 = vrsqrt.f32 %v2403_v9 }
 0x86c   : > { %v3307_v32 = vpop.eup %3306 }
 0x86d   : > { %v2405_v49 = vmul.f32 %v3307_v32, %v2394_v14 }
 0x86f   : > { %v2406_v16 = vmul.f32 %v4279_v44, %v2405_v49 }
 0x871   : > { %v2407_v17 = vadd.f32 %v4284_v38, %v2406_v16 }
 0x873   : > { %v2408_v19 = vpack.c.bf16 %v2407_v17, %v2407_v17  ;;  %v2542_v20 = vmul.f32 %v2407_v17, %v2407_v17  ;;  %v2536_v23 = vmul.f32 %v2407_v17, %v4457_v24 }
 0x875   : > { %2442 = vmatmul.mubr.bf16.vlgmr.msra.gmra.mrb[20].mxu0 %v2408_v19  ;;  %2543 = vadd.xlane.f32.xlu0 %v2542_v20 }
 0x879   : > { %2537 = vadd.xlane.f32.xlu0 %v2536_v23 }
 0x948   : > { %v2443_v25 = vpop.f32.mrb[20].mxu0 }
 0x949   : > { %v2444_v26 = vadd.f32 %v2443_v25, %v4376_v60  ;;  %v2445_v27 = vpop.f32.mrb[21].mxu0 }
 0x94a   : > { %v2446_v29 = vadd.f32 %v2445_v27, %v4379_v59  ;;  %v2447_v30 = vpop.f32.mrb[22].mxu0 }
 0x94b   : > { %v2450_v31 = vrot.slane %v2444_v26, 4  ;;  %v2448_v7 = vpop.f32.mrb[23].mxu0 }
 0x94c   : > { %v2456_v55 = vrot.slane %v2446_v29, 4 }
 0x94d   : > { %v2451_v44 = vadd.f32 %v2450_v31, %v2444_v26 }
 0x94e   : > { %v2457_v63 = vadd.f32 %v2456_v55, %v2446_v29 }
 0x94f   : > { %v2452_v38 = vrot.slane %v2451_v44, 2 }
 0x950   : > { %v2458_v2 = vrot.slane %v2457_v63, 2 }
 0x951   : > { %v2453_v50 = vadd.f32 %v2452_v38, %v2451_v44 }
 0x952   : > { %v2459_v36 = vadd.f32 %v2458_v2, %v2457_v63 }
 0x953   : > { %v2454_v34 = vrot.slane %v2453_v50, 1 }
 0x954   : > { %v2460_v62 = vrot.slane %v2459_v36, 1 }
 0x955   : > { %v2455_v24 = vadd.f32 %v2454_v34, %v2453_v50 }
 0x956   : > { %v2461_v45 = vadd.f32 %v2460_v62, %v2459_v36 }
 0x957   : > { %v2462_v10 = vmul.f32 0.125, %v2455_v24 }
 0x958   : > { %v2463_v41 = vmul.f32 0.125, %v2461_v45 }
 0x959   : > { %v2464_v60 = vsub.f32 %v2444_v26, %v2462_v10 }
 0x95a   : > { %v2465_v4 = vsub.f32 %v2446_v29, %v2463_v41 }
 0x95b   : > { %v2466_v40 = vmul.f32 %v2464_v60, %v2464_v60 }
 0x95c   : > { %v2467_v59 = vmul.f32 %v2465_v4, %v2465_v4 }
 0x95d   : > { %v2468_v33 = vrot.slane %v2466_v40, 4 }
 0x95e   : > { %v2474_v8 = vrot.slane %v2467_v59, 4 }
 0x95f   : > { %v2469_v37 = vadd.f32 %v2468_v33, %v2466_v40 }
 0x960   : > { %v2475_v35 = vadd.f32 %v2474_v8, %v2467_v59 }
 0x961   : > { %v2470_v28 = vrot.slane %v2469_v37, 2 }
 0x962   : > { %v2476_v51 = vrot.slane %v2475_v35, 2 }
 0x963   : > { %v2471_v57 = vadd.f32 %v2470_v28, %v2469_v37 }
 0x964   : > { %v2477_v13 = vadd.f32 %v2476_v51, %v2475_v35 }
 0x965   : > { %v2472_v46 = vrot.slane %v2471_v57, 1 }
 0x966   : > { %v2478_v5 = vrot.slane %v2477_v13, 1 }
 0x967   : > { %v2473_v11 = vadd.f32 %v2472_v46, %v2471_v57 }
 0x968   : > { %v2479_v48 = vadd.f32 %v2478_v5, %v2477_v13 }
 0x969   : > { %v2480_v47 = vmul.f32 0.125, %v2473_v11 }
 0x96a   : > { %v2481_v22 = vmul.f32 0.125, %v2479_v48 }
 0x96b   : > { %v2482_v39 = vadd.f32 1e-05, %v2480_v47 }
 0x96c   : > { %v2483_v0 = vadd.f32 1e-05, %v2481_v22 }
 0x96d   : > { %3308 = vrsqrt.f32 %v2482_v39 }
 0x96e   : > { %3310 = vrsqrt.f32 %v2483_v0 }
 0x977   : > { %v3309_v12 = vpop.eup %3308 }
 0x978   : > { %v3311_v14 = vpop.eup %3310  ;;  %v2486_v1 = vmul.f32 %v3309_v12, %v2464_v60 }
 0x979   : > { %v2487_v61 = vmul.f32 %v3311_v14, %v2465_v4 }
 0x97a   : > { %v2488_v54 = vmul.f32 %v2486_v1, %v4386_v6 }
 0x97b   : > { %v2489_v58 = vmul.f32 %v2487_v61, %v4389_v43  ;;  %v2569_v43 = vmul.f32 %v4288_v42, %v4288_v42 }
 0x97c   : > { %v2490_v53 = vadd.f32 %v2488_v54, %v4392_v15 }
 0x97d   : > { %v2491_v3 = vadd.f32 %v2489_v58, %v4395_v56  ;;  %v2541_v56 = vpop.xlane.xlu0 %2540 }
 0x97e   : > { %v2492_v52 = vmax.f32 %v2490_v53, 0.0 }
 0x97f   : > { %v2493_v21 = vmax.f32 %v2491_v3, 0.0 }
 0x980   : > { %v2494_v32 = vpack.c.bf16 %v2492_v52, %v2492_v52 }
 0x981   : > { %v2495_v9 = vpack.c.bf16 %v2493_v21, %v2493_v21  ;;  %v2544_v25 = vpop.xlane.xlu0 %2543 }
 0x982   : > { %v2545_v26 = vmul.f32 %v2544_v25, %v2541_v56 }
 0x983   : > { %2528 = vmatprep.mubr.bf16.mxu1 %v2495_v9 }
 0x984   : > { %2529 = vmatmul.mubr.bf16.vlgmr.msra.gmra.mrb[12].mxu1 %v2494_v32  ;;  %3312 = vrsqrt.f32 %v2545_v26  ;;  %vm2548_vm0 = vcmp.eq.f32.partialorder %v2545_v26, inf  ;;  %v2551_v31 = vand.u32 2147483648, %v2545_v26  ;;  %vm2550_vm1 = vcmp.eq.f32.partialorder %v2545_v26, 0.0 }
 0x985   : > { %v2538_v36 = vpop.xlane.xlu0 %2537 }
 0x98e   : > { %v3313_v27 = vpop.eup %3312 }
 0x98f   : > { %v2547_v29 = vmul.f32 %v3313_v27, %v2545_v26 }
 0x991   : > { %v2549_v30 = vsel %vm2548_vm0, %v2545_v26, %v2547_v29 }
 0x992   : > { %v2552_v7 = vsel %vm2550_vm1, %v2551_v31, %v2549_v30 }
 0x993   : > { %v2553_v55 = vmax.f32 %v2552_v7, 1e-08 }
 0xa57   : > { %v3046_v49 = vpop.f32.mrb[12].mxu1 }
 0xa58   : > { %v3047_v16 = vpop.f32.mrb[13].mxu1 }
 0xa59   : > { %v3048_v17 = vadd.f32 %v3047_v16, %v3046_v49  ;;  %v3049_v19 = vpop.f32.mrb[14].mxu1 }
 0xa5a   : > { %v3050_v20 = vpop.f32.mrb[15].mxu1 }
 0xa5b   : > { %v2531_v23 = vadd.f32 %v3048_v17, %v4454_v18 }
 0xa5d   : > { %v2566_v6 = vmul.f32 %v2531_v23, %v2531_v23  ;;  %v2563_v15 = vmul.f32 %v2531_v23, %v4288_v42 }
 0xa5f   : > { %2567 = vadd.xlane.f32.xlu1 %v2566_v6 }
 0xa63   : > { %2570 = vadd.xlane.f32.xlu1 %v2569_v43 }
 0xa67   : > { %2564 = vadd.xlane.f32.xlu1 %v2563_v15 }
 0xaec   : > { %v2568_v18 = vpop.xlane.xlu1 %2567 }
 0xaf0   : > { %v2571_v44 = vpop.xlane.xlu1 %2570 }
 0xaf1   : > { %v2572_v63 = vmul.f32 %v2571_v44, %v2568_v18 }
 0xaf3   : > { %3314 = vrsqrt.f32 %v2572_v63  ;;  %vm2575_vm2 = vcmp.eq.f32.partialorder %v2572_v63, inf  ;;  %v2578_v50 = vand.u32 2147483648, %v2572_v63  ;;  %vm2577_vm3 = vcmp.eq.f32.partialorder %v2572_v63, 0.0 }
 0xaf4   : > { %3316 = vrcp.f32 %v2553_v55  ;;  %v2565_v40 = vpop.xlane.xlu1 %2564 }
 0xafd   : > { %v3315_v38 = vpop.eup %3314 }
 0xafe   : > { %v3317_v42 = vpop.eup %3316  ;;  %v2574_v2 = vmul.f32 %v3315_v38, %v2572_v63 }
 0xaff   : > { %v2555_v62 = vmul.f32 %v3317_v42, %v2538_v36 }
 0xb00   : > { %v2576_v34 = vsel %vm2575_vm2, %v2572_v63, %v2574_v2 }
 0xb01   : > { %v2579_v24 = vsel %vm2577_vm3, %v2578_v50, %v2576_v34  ;;  %v2556_v10 = vrot.slane %v2555_v62, 4 }
 0xb02   : > { %v2580_v45 = vmax.f32 %v2579_v24, 1e-08 }
 0xb03   : > { %v2557_v41 = vadd.f32 %v2556_v10, %v2555_v62 }
 0xb04   : > { %3318 = vrcp.f32 %v2580_v45 }
 0xb05   : > { %v2558_v60 = vrot.slane %v2557_v41, 2 }
 0xb07   : > { %v2559_v33 = vadd.f32 %v2558_v60, %v2557_v41 }
 0xb09   : > { %v2560_v35 = vrot.slane %v2559_v33, 1 }
 0xb0b   : > { %v2561_v57 = vadd.f32 %v2560_v35, %v2559_v33 }
 0xb0d   : > { %v2562_v5 = vsub.f32 0.0, %v2561_v57 }
 0xb0e   : > { %v3319_v4 = vpop.eup %3318 }
 0xb0f   : > { %v2582_v59 = vmul.f32 %v3319_v4, %v2565_v40 }
 0xb11   : > { %v2583_v8 = vrot.slane %v2582_v59, 4 }
 0xb13   : > { %v2584_v37 = vadd.f32 %v2583_v8, %v2582_v59 }
 0xb15   : > { %v2585_v28 = vrot.slane %v2584_v37, 2 }
 0xb17   : > { %v2586_v51 = vadd.f32 %v2585_v28, %v2584_v37 }
 0xb19   : > { %v2587_v13 = vrot.slane %v2586_v51, 1 }
 0xb1b   : > { %v2588_v46 = vadd.f32 %v2587_v13, %v2586_v51 }
 0xb1d   : > { %v2589_v11 = vsub.f32 0.0, %v2588_v46 }
 0xb1f   : > { %v2590_v48 = vadd.f32 %v2589_v11, %v2562_v5 }
 0xb21   : > { %v2591_v47 = vmul.f32 0.0625, %v2590_v48 }
 0xb23   : > { %2592 = vst [vmem:[#allocation13] sm:$0x1] %v2591_v47 }
 0xb24 PF: > { %p3102_p10 = scmp.eq.s32.totalorder %s3604_s16, 1  ;;  %s3522_s17 = smov [#allocation13]  }
 0xb25   : > { %s2600_s20 = sshll.u32 %s3522_s17, 4  ;;  %s2601_s20 = int_to_ptr.vmem [resolvable:$true] %s2600_s20 }
 0xb26   : > { %s3461_s28 = scalar_lea.vmem %s2601_s20, 16  ;;  %s3467_s30 = scalar_lea.vmem %s2601_s20, 32 }
 0xb27   : > { %p3462_p11 = scmp.ne.s32.totalorder %s2601_s20, %s3461_s28  ;;  %p3468_p8 = scmp.lt.s32.totalorder %s2601_s20, %s2601_s20 }
 0xb28   : > { %p3469_p0 = scmp.lt.s32.totalorder %s3467_s30, %s3461_s28 }
 0xb29   : > { %p3463_p12 = pnand %p3462_p11, %p3102_p10 }
 0xb2a   : > { %p3470_p1 = por %p3469_p0, %p3468_p8 }
 0xb2b   : > { %p3464_p13 = pneg %p3463_p12 }
 0xb2d   : > { %p3471_p3 = pnand %p3470_p1, %p3464_p13 }
 0xb2f   : > { %3474 = shalt.err (!%p3471_p3)
}
 0xb30   : > { %s4720_s27 = sld [smem:[#allocation72_spill]] }
 0xb36   : > { %s3475_s18 = scalar_lea.hbm %s4720_s27, 16 }
 0xb37   : > { %p3476_p4 = scmp.ne.s32.totalorder %s4720_s27, %s3475_s18  ;;  %p3481_p7 = scmp.lt.u32.totalorder %s3475_s18, %s4720_s27 }
 0xb39   : > { %p3477_p6 = pnand %p3476_p4, %p3102_p10 }
 0xb3b   : > { %p3478_p5 = pneg %p3477_p6 }
 0xb3d   : > { %p3483_p9 = pnand %p3481_p7, %p3478_p5 }
 0xb3f   : > { %3486 = shalt.err (!%p3483_p9)
}
 0xb40   : > { %3073 = dma.vmem_to_hbm [thread:$0]  (%p3102_p10), %s2601_s20, 16, %s4720_s27, [#allocation6]  }
 0xb41   : > { %3504 = dma.done.wait (%p3102_p10), [#allocation6], 16  }
 0xb42   : > { %3506 = vsyncadd (%p3102_p10), [#allocation6], 4294967280 }
 0xb43 PF: > { %s4721_s26 = sld [smem:[#allocation18_spill]] }
 0xb49   : > { %s28_s29 = sadd.s32 1, %s4721_s26  }
 0xb4a   : > { %p25_p2 = scmp.ge.s32.totalorder %s28_s29, 4  }
 0xb4c   :  { %27 = sbr.rel (!%p25_p2) target bundleno = 7 (0x7), region = 144 }
 0xb53   :  { %2613 = vsyncpa [#allocation5], 1 }
 0xb54   :  { %2615 = vsyncpa [#allocation5 + $0x1], 1 }
 0xb55   :  { %2616 = vsyncpa [#allocation8], 1 }
 0xb56   :  { %2617 = vsyncpa [#allocation11], 1 }
 0xb57   :  { %2618 = vsyncpa [#allocation6], 1 }
 0xb58   :  { %2620 = vsyncpa [#allocation6 + $0x1], 1 }

</bundles_post_ra>
